<compile_context>
chip_gen: v6e
topology: v6e:2x2x1
jax: 0.10.0
libtpu: 0.0.40
codegen_flags: <defaults>
</compile_context>

<pallas_src>
import functools

import jax
import jax.numpy as jnp
from jax.experimental import pallas as pl
from jax.experimental.pallas import tpu as pltpu

NEG_SLOPE = 0.01  # nn.LeakyReLU() default


def _leaky_relu(x):
    return jnp.where(x >= 0, x, NEG_SLOPE * x)


def _softmax(x):
    m = jnp.max(x, axis=-1, keepdims=True)
    e = jnp.exp(x - m)
    return e / jnp.sum(e, axis=-1, keepdims=True)


def mgn_kernel(x1_ref, x2_ref, pool_ref,
               wp1_ref, bp1_ref, wp2_ref, bp2_ref,
               wm1s_ref, wm1t_ref, bm1_ref, wm2_ref, bm2_ref,
               wd1_ref, bd1_ref, wd2_ref, bd2_ref, wd3_ref, bd3_ref,
               wb1_ref, bb1_ref, wb2_ref, bb2_ref, wb3_ref, bb3_ref,
               outp_ref, out1_ref, out2_ref, *, inv_tem):
    f32 = jnp.float32

    xs = x1_ref[...]                                     # (BN*W, d)
    xt = x2_ref[...]

    # psi_1 / psi_2 : Conv2d(1,C,(d,1),(d,1))  ==  per-position Linear(d, C)
    h_s = jnp.dot(xs, wp1_ref[...], preferred_element_type=f32) + bp1_ref[...]
    h_t = jnp.dot(xt, wp2_ref[...], preferred_element_type=f32) + bp2_ref[...]

    # mlp1: Linear(2C,4C) on concat(h_s,h_t) == h_s @ W[:C] + h_t @ W[C:]
    h = (jnp.dot(h_s, wm1s_ref[...], preferred_element_type=f32)
         + jnp.dot(h_t, wm1t_ref[...], preferred_element_type=f32)
         + bm1_ref[...])
    h = jnp.maximum(h, 0.0)                              # ReLU
    h = jnp.dot(h, wm2_ref[...], preferred_element_type=f32) + bm2_ref[...]

    # mean over the sequence dim via block-diagonal pooling matmul
    pool = pool_ref[...]                                 # (BN, BN*W)
    out = jnp.dot(pool, h, preferred_element_type=f32)   # (BN, 2C)

    # dense1 -> dense2 -> dense3 -> softmax  (no activations, as in the spec)
    out = jnp.dot(out, wd1_ref[...], preferred_element_type=f32) + bd1_ref[...]
    out = jnp.dot(out, wd2_ref[...], preferred_element_type=f32) + bd2_ref[...]
    out = jnp.dot(out, wd3_ref[...], preferred_element_type=f32) + bd3_ref[...]
    outp_ref[...] = _softmax(out).astype(outp_ref.dtype)

    # BYOT heads (both use byot1's weights, matching the reference forward).
    # Dropout(0.4) layers run as identity (eval mode).
    def byot_head(z):
        z = _leaky_relu(jnp.dot(z, wb1_ref[...], preferred_element_type=f32) + bb1_ref[...])
        z = _leaky_relu(jnp.dot(z, wb2_ref[...], preferred_element_type=f32) + bb2_ref[...])
        z = _leaky_relu(jnp.dot(z, wb3_ref[...], preferred_element_type=f32) + bb3_ref[...])
        return _softmax(z * inv_tem)

    hs_mean = jnp.dot(pool, h_s, preferred_element_type=f32)   # (BN, C)
    ht_mean = jnp.dot(pool, h_t, preferred_element_type=f32)
    out1_ref[...] = byot_head(hs_mean).astype(out1_ref.dtype)
    out2_ref[...] = byot_head(ht_mean).astype(out2_ref.dtype)


def mgn_forward(x1, x2, params, *, tem=1.0, block_batch=None):
    B, one, d, W = x1.shape
    assert one == 1 and x2.shape == x1.shape
    num_classes = params["wd3"].shape[1]

    if block_batch is None:
        block_batch = B if B <= 8 else 8
    assert B % block_batch == 0
    assert block_batch == B or block_batch % 8 == 0, "batch block must be sublane-aligned"
    bn = block_batch
    rows = bn * W
    grid = (B // bn,)

    # Host-side layout plumbing only: (B,1,d,W) -> (B*W, d) rows so the kernel
    # sees plain 2D MXU matmuls.
    x1_2d = jnp.transpose(x1[:, 0], (0, 2, 1)).reshape(B * W, d).astype(jnp.float32)
    x2_2d = jnp.transpose(x2[:, 0], (0, 2, 1)).reshape(B * W, d).astype(jnp.float32)

    # Block-diagonal mean-pooling matrix (same for every grid step).
    pool = jnp.repeat(jnp.eye(bn, dtype=jnp.float32), W, axis=1) / float(W)

    row_spec = pl.BlockSpec((rows, d), lambda i: (i, 0))
    out_spec = pl.BlockSpec((bn, num_classes), lambda i: (i, 0))

    def resident(a):  # full-array block, constant index_map -> stays in VMEM
        return pl.BlockSpec(a.shape, lambda i: (0,) * a.ndim)

    weight_keys = ("wp1", "bp1", "wp2", "bp2",
                   "wm1_s", "wm1_t", "bm1", "wm2", "bm2",
                   "wd1", "bd1", "wd2", "bd2", "wd3", "bd3",
                   "wb1", "bb1", "wb2", "bb2", "wb3", "bb3")
    weights = [params[k] for k in weight_keys]

    out_shape = tuple(jax.ShapeDtypeStruct((B, num_classes), jnp.float32)
                      for _ in range(3))

    return pl.pallas_call(
        functools.partial(mgn_kernel, inv_tem=float(1.0 / tem)),
        out_shape=out_shape,
        grid_spec=pltpu.PrefetchScalarGridSpec(
            num_scalar_prefetch=0,
            grid=grid,
            in_specs=[row_spec, row_spec, resident(pool)]
                     + [resident(w) for w in weights],
            out_specs=[out_spec, out_spec, out_spec],
        ),
        compiler_params=pltpu.CompilerParams(
            dimension_semantics=("parallel",),
            vmem_limit_bytes=32 * 1024 * 1024,
        ),
    )(x1_2d, x2_2d, pool, *weights)


# ----------------------------------------------------------------------------
# Pure-JAX reference (mirrors the PyTorch forward, eval-mode dropout).
# ----------------------------------------------------------------------------
def mgn_reference(x1, x2, p, tem=1.0):
    xs = jnp.transpose(x1[:, 0], (0, 2, 1))              # (B, W, d)
    xt = jnp.transpose(x2[:, 0], (0, 2, 1))
    h_s = xs @ p["wp1"] + p["bp1"]
    h_t = xt @ p["wp2"] + p["bp2"]
    wm1 = jnp.concatenate([p["wm1_s"], p["wm1_t"]], axis=0)
    h = jnp.concatenate([h_s, h_t], axis=-1)
    h = jnp.maximum(h @ wm1 + p["bm1"], 0.0)
    h = h @ p["wm2"] + p["bm2"]
    out = h.mean(axis=1)
    out = out @ p["wd1"] + p["bd1"]
    out = out @ p["wd2"] + p["bd2"]
    out = out @ p["wd3"] + p["bd3"]

    def byot(z):
        z = _leaky_relu(z @ p["wb1"] + p["bb1"])
        z = _leaky_relu(z @ p["wb2"] + p["bb2"])
        z = _leaky_relu(z @ p["wb3"] + p["bb3"])
        return jax.nn.softmax(z / tem, axis=-1)

    return (jax.nn.softmax(out, axis=-1), byot(h_s.mean(1)), byot(h_t.mean(1)))


def init_params(key, d, channel, num_classes=2):
    sink = 2

    def linear(k, fan_in, fan_out):
        kw, kb = jax.random.split(k)
        bound = 1.0 / float(fan_in) ** 0.5
        w = jax.random.uniform(kw, (fan_in, fan_out), jnp.float32, -bound, bound)
        b = jax.random.uniform(kb, (1, fan_out), jnp.float32, -bound, bound)
        return w, b

    ks = jax.random.split(key, 10)
    wp1, bp1 = linear(ks[0], d, channel)            # Conv2d(1,C,(d,1)) ≡ Linear(d,C)
    wp2, bp2 = linear(ks[1], d, channel)
    wm1, bm1 = linear(ks[2], sink * channel, 2 * sink * channel)
    wm2, bm2 = linear(ks[3], 2 * sink * channel, sink * channel)
    wd1, bd1 = linear(ks[4], sink * channel, 128)
    wd2, bd2 = linear(ks[5], 128, 30)
    wd3, bd3 = linear(ks[6], 30, num_classes)
    wb1, bb1 = linear(ks[7], channel, 128)
    wb2, bb2 = linear(ks[8], 128, 30)
    wb3, bb3 = linear(ks[9], 30, num_classes)
    return dict(wp1=wp1, bp1=bp1, wp2=wp2, bp2=bp2,
                wm1_s=wm1[:channel], wm1_t=wm1[channel:], bm1=bm1,
                wm2=wm2, bm2=bm2,
                wd1=wd1, bd1=bd1, wd2=wd2, bd2=bd2, wd3=wd3, bd3=bd3,
                wb1=wb1, bb1=bb1, wb2=wb2, bb2=bb2, wb3=wb3, bb3=bb3)


if __name__ == "__main__":
    # Small shapes consistent with the module: args.channel=32, kernel_size=16,
    # sequence width W=8, num_classes=2.  B=16 with block_batch=8 exercises the
    # batch-tiled grid (2 steps).
    B, d, W, C = 16, 16, 8, 32

    key = jax.random.PRNGKey(0)
    kx1, kx2, kp = jax.random.split(key, 3)
    x1 = jax.random.normal(kx1, (B, 1, d, W), jnp.float32)
    x2 = jax.random.normal(kx2, (B, 1, d, W), jnp.float32)
    params = init_params(kp, d, C, num_classes=2)

    out_p, out1_p, out2_p = mgn_forward(x1, x2, params, tem=1.0, block_batch=8)
    jax.block_until_ready((out_p, out1_p, out2_p))

    ref = mgn_reference(x1, x2, params, tem=1.0)
    for got, want in zip((out_p, out1_p, out2_p), ref):
        assert got.shape == (B, 2) and got.dtype == jnp.float32
        assert jnp.allclose(got, want, atol=2e-3, rtol=2e-3), \
            float(jnp.max(jnp.abs(got - want)))
    print("KERNEL_OK")
</pallas_src>

<mosaic_0001>
module attributes {stable_mosaic.version = 11 : i64} {
  func.func @mgn_kernel(%arg0: i32, %arg1: memref<64x16xf32, #tpu.memory_space<vmem>>, %arg2: memref<64x16xf32, #tpu.memory_space<vmem>>, %arg3: memref<8x64xf32, #tpu.memory_space<vmem>>, %arg4: memref<16x32xf32, #tpu.memory_space<vmem>>, %arg5: memref<1x32xf32, #tpu.memory_space<vmem>>, %arg6: memref<16x32xf32, #tpu.memory_space<vmem>>, %arg7: memref<1x32xf32, #tpu.memory_space<vmem>>, %arg8: memref<32x128xf32, #tpu.memory_space<vmem>>, %arg9: memref<32x128xf32, #tpu.memory_space<vmem>>, %arg10: memref<1x128xf32, #tpu.memory_space<vmem>>, %arg11: memref<128x64xf32, #tpu.memory_space<vmem>>, %arg12: memref<1x64xf32, #tpu.memory_space<vmem>>, %arg13: memref<64x128xf32, #tpu.memory_space<vmem>>, %arg14: memref<1x128xf32, #tpu.memory_space<vmem>>, %arg15: memref<128x30xf32, #tpu.memory_space<vmem>>, %arg16: memref<1x30xf32, #tpu.memory_space<vmem>>, %arg17: memref<30x2xf32, #tpu.memory_space<vmem>>, %arg18: memref<1x2xf32, #tpu.memory_space<vmem>>, %arg19: memref<32x128xf32, #tpu.memory_space<vmem>>, %arg20: memref<1x128xf32, #tpu.memory_space<vmem>>, %arg21: memref<128x30xf32, #tpu.memory_space<vmem>>, %arg22: memref<1x30xf32, #tpu.memory_space<vmem>>, %arg23: memref<30x2xf32, #tpu.memory_space<vmem>>, %arg24: memref<1x2xf32, #tpu.memory_space<vmem>>, %arg25: memref<8x2xf32, #tpu.memory_space<vmem>>, %arg26: memref<8x2xf32, #tpu.memory_space<vmem>>, %arg27: memref<8x2xf32, #tpu.memory_space<vmem>>) attributes {dimension_semantics = [#tpu.dimension_semantics<parallel>], iteration_bounds = array<i64: 2>, scalar_prefetch = 0 : i64, scratch_operands = 0 : i64, tpu.core_type = #tpu.core_type<tc>, window_params = [{transform_indices = @transform_0, window_bounds = array<i64: 64, 16>}, {transform_indices = @transform_1, window_bounds = array<i64: 64, 16>}, {pipeline_mode = #tpu.pipeline_mode<synchronous>, transform_indices = @transform_2, window_bounds = array<i64: 8, 64>}, {pipeline_mode = #tpu.pipeline_mode<synchronous>, transform_indices = @transform_3, window_bounds = array<i64: 16, 32>}, {pipeline_mode = #tpu.pipeline_mode<synchronous>, transform_indices = @transform_4, window_bounds = array<i64: 1, 32>}, {pipeline_mode = #tpu.pipeline_mode<synchronous>, transform_indices = @transform_5, window_bounds = array<i64: 16, 32>}, {pipeline_mode = #tpu.pipeline_mode<synchronous>, transform_indices = @transform_6, window_bounds = array<i64: 1, 32>}, {pipeline_mode = #tpu.pipeline_mode<synchronous>, transform_indices = @transform_7, window_bounds = array<i64: 32, 128>}, {pipeline_mode = #tpu.pipeline_mode<synchronous>, transform_indices = @transform_8, window_bounds = array<i64: 32, 128>}, {pipeline_mode = #tpu.pipeline_mode<synchronous>, transform_indices = @transform_9, window_bounds = array<i64: 1, 128>}, {pipeline_mode = #tpu.pipeline_mode<synchronous>, transform_indices = @transform_10, window_bounds = array<i64: 128, 64>}, {pipeline_mode = #tpu.pipeline_mode<synchronous>, transform_indices = @transform_11, window_bounds = array<i64: 1, 64>}, {pipeline_mode = #tpu.pipeline_mode<synchronous>, transform_indices = @transform_12, window_bounds = array<i64: 64, 128>}, {pipeline_mode = #tpu.pipeline_mode<synchronous>, transform_indices = @transform_13, window_bounds = array<i64: 1, 128>}, {pipeline_mode = #tpu.pipeline_mode<synchronous>, transform_indices = @transform_14, window_bounds = array<i64: 128, 30>}, {pipeline_mode = #tpu.pipeline_mode<synchronous>, transform_indices = @transform_15, window_bounds = array<i64: 1, 30>}, {pipeline_mode = #tpu.pipeline_mode<synchronous>, transform_indices = @transform_16, window_bounds = array<i64: 30, 2>}, {pipeline_mode = #tpu.pipeline_mode<synchronous>, transform_indices = @transform_17, window_bounds = array<i64: 1, 2>}, {pipeline_mode = #tpu.pipeline_mode<synchronous>, transform_indices = @transform_18, window_bounds = array<i64: 32, 128>}, {pipeline_mode = #tpu.pipeline_mode<synchronous>, transform_indices = @transform_19, window_bounds = array<i64: 1, 128>}, {pipeline_mode = #tpu.pipeline_mode<synchronous>, transform_indices = @transform_20, window_bounds = array<i64: 128, 30>}, {pipeline_mode = #tpu.pipeline_mode<synchronous>, transform_indices = @transform_21, window_bounds = array<i64: 1, 30>}, {pipeline_mode = #tpu.pipeline_mode<synchronous>, transform_indices = @transform_22, window_bounds = array<i64: 30, 2>}, {pipeline_mode = #tpu.pipeline_mode<synchronous>, transform_indices = @transform_23, window_bounds = array<i64: 1, 2>}, {transform_indices = @transform_24, window_bounds = array<i64: 8, 2>}, {transform_indices = @transform_25, window_bounds = array<i64: 8, 2>}, {transform_indices = @transform_26, window_bounds = array<i64: 8, 2>}]} {
    %c0 = arith.constant 0 : index
    %c0_0 = arith.constant 0 : index
    %0 = vector.load %arg1[%c0, %c0_0] : memref<64x16xf32, #tpu.memory_space<vmem>>, vector<64x16xf32>
    %c0_1 = arith.constant 0 : index
    %c0_2 = arith.constant 0 : index
    %1 = vector.load %arg2[%c0_1, %c0_2] : memref<64x16xf32, #tpu.memory_space<vmem>>, vector<64x16xf32>
    %c0_3 = arith.constant 0 : index
    %c0_4 = arith.constant 0 : index
    %2 = vector.load %arg4[%c0_3, %c0_4] : memref<16x32xf32, #tpu.memory_space<vmem>>, vector<16x32xf32>
    %cst = arith.constant dense<0.000000e+00> : vector<64x32xf32>
    %3 = tpu.matmul %0, %2, %cst {dimension_numbers = #tpu.dot_dimension_numbers<[1], [0], [0], [1], [0, 0, 1, 1], [], []>} : vector<64x16xf32>, vector<16x32xf32>, vector<64x32xf32> -> vector<64x32xf32>
    %c0_5 = arith.constant 0 : index
    %c0_6 = arith.constant 0 : index
    %4 = vector.load %arg5[%c0_5, %c0_6] : memref<1x32xf32, #tpu.memory_space<vmem>>, vector<1x32xf32>
    %5 = vector.broadcast %4 : vector<1x32xf32> to vector<64x32xf32>
    %6 = arith.addf %3, %5 : vector<64x32xf32>
    %c0_7 = arith.constant 0 : index
    %c0_8 = arith.constant 0 : index
    %7 = vector.load %arg6[%c0_7, %c0_8] : memref<16x32xf32, #tpu.memory_space<vmem>>, vector<16x32xf32>
    %cst_9 = arith.constant dense<0.000000e+00> : vector<64x32xf32>
    %8 = tpu.matmul %1, %7, %cst_9 {dimension_numbers = #tpu.dot_dimension_numbers<[1], [0], [0], [1], [0, 0, 1, 1], [], []>} : vector<64x16xf32>, vector<16x32xf32>, vector<64x32xf32> -> vector<64x32xf32>
    %c0_10 = arith.constant 0 : index
    %c0_11 = arith.constant 0 : index
    %9 = vector.load %arg7[%c0_10, %c0_11] : memref<1x32xf32, #tpu.memory_space<vmem>>, vector<1x32xf32>
    %10 = vector.broadcast %9 : vector<1x32xf32> to vector<64x32xf32>
    %11 = arith.addf %8, %10 : vector<64x32xf32>
    %c0_12 = arith.constant 0 : index
    %c0_13 = arith.constant 0 : index
    %12 = vector.load %arg8[%c0_12, %c0_13] : memref<32x128xf32, #tpu.memory_space<vmem>>, vector<32x128xf32>
    %cst_14 = arith.constant dense<0.000000e+00> : vector<64x128xf32>
    %13 = tpu.matmul %6, %12, %cst_14 {dimension_numbers = #tpu.dot_dimension_numbers<[1], [0], [0], [1], [0, 0, 1, 1], [], []>} : vector<64x32xf32>, vector<32x128xf32>, vector<64x128xf32> -> vector<64x128xf32>
    %c0_15 = arith.constant 0 : index
    %c0_16 = arith.constant 0 : index
    %14 = vector.load %arg9[%c0_15, %c0_16] : memref<32x128xf32, #tpu.memory_space<vmem>>, vector<32x128xf32>
    %cst_17 = arith.constant dense<0.000000e+00> : vector<64x128xf32>
    %15 = tpu.matmul %11, %14, %cst_17 {dimension_numbers = #tpu.dot_dimension_numbers<[1], [0], [0], [1], [0, 0, 1, 1], [], []>} : vector<64x32xf32>, vector<32x128xf32>, vector<64x128xf32> -> vector<64x128xf32>
    %16 = arith.addf %13, %15 : vector<64x128xf32>
    %c0_18 = arith.constant 0 : index
    %c0_19 = arith.constant 0 : index
    %17 = vector.load %arg10[%c0_18, %c0_19] : memref<1x128xf32, #tpu.memory_space<vmem>>, vector<1x128xf32>
    %18 = vector.broadcast %17 : vector<1x128xf32> to vector<64x128xf32>
    %19 = arith.addf %16, %18 : vector<64x128xf32>
    %cst_20 = arith.constant 0.000000e+00 : f32
    %20 = vector.broadcast %cst_20 : f32 to vector<64x128xf32>
    %21 = arith.maximumf %19, %20 : vector<64x128xf32>
    %c0_21 = arith.constant 0 : index
    %c0_22 = arith.constant 0 : index
    %22 = vector.load %arg11[%c0_21, %c0_22] : memref<128x64xf32, #tpu.memory_space<vmem>>, vector<128x64xf32>
    %cst_23 = arith.constant dense<0.000000e+00> : vector<64x64xf32>
    %23 = tpu.matmul %21, %22, %cst_23 {dimension_numbers = #tpu.dot_dimension_numbers<[1], [0], [0], [1], [0, 0, 1, 1], [], []>} : vector<64x128xf32>, vector<128x64xf32>, vector<64x64xf32> -> vector<64x64xf32>
    %c0_24 = arith.constant 0 : index
    %c0_25 = arith.constant 0 : index
    %24 = vector.load %arg12[%c0_24, %c0_25] : memref<1x64xf32, #tpu.memory_space<vmem>>, vector<1x64xf32>
    %25 = vector.broadcast %24 : vector<1x64xf32> to vector<64x64xf32>
    %26 = arith.addf %23, %25 : vector<64x64xf32>
    %c0_26 = arith.constant 0 : index
    %c0_27 = arith.constant 0 : index
    %27 = vector.load %arg3[%c0_26, %c0_27] : memref<8x64xf32, #tpu.memory_space<vmem>>, vector<8x64xf32>
    %cst_28 = arith.constant dense<0.000000e+00> : vector<8x64xf32>
    %28 = tpu.matmul %27, %26, %cst_28 {dimension_numbers = #tpu.dot_dimension_numbers<[1], [0], [0], [1], [0, 0, 1, 1], [], []>} : vector<8x64xf32>, vector<64x64xf32>, vector<8x64xf32> -> vector<8x64xf32>
    %c0_29 = arith.constant 0 : index
    %c0_30 = arith.constant 0 : index
    %29 = vector.load %arg13[%c0_29, %c0_30] : memref<64x128xf32, #tpu.memory_space<vmem>>, vector<64x128xf32>
    %cst_31 = arith.constant dense<0.000000e+00> : vector<8x128xf32>
    %30 = tpu.matmul %28, %29, %cst_31 {dimension_numbers = #tpu.dot_dimension_numbers<[1], [0], [0], [1], [0, 0, 1, 1], [], []>} : vector<8x64xf32>, vector<64x128xf32>, vector<8x128xf32> -> vector<8x128xf32>
    %c0_32 = arith.constant 0 : index
    %c0_33 = arith.constant 0 : index
    %31 = vector.load %arg14[%c0_32, %c0_33] : memref<1x128xf32, #tpu.memory_space<vmem>>, vector<1x128xf32>
    %32 = vector.broadcast %31 : vector<1x128xf32> to vector<8x128xf32>
    %33 = arith.addf %30, %32 : vector<8x128xf32>
    %c0_34 = arith.constant 0 : index
    %c0_35 = arith.constant 0 : index
    %34 = vector.load %arg15[%c0_34, %c0_35] : memref<128x30xf32, #tpu.memory_space<vmem>>, vector<128x30xf32>
    %cst_36 = arith.constant dense<0.000000e+00> : vector<8x30xf32>
    %35 = tpu.matmul %33, %34, %cst_36 {dimension_numbers = #tpu.dot_dimension_numbers<[1], [0], [0], [1], [0, 0, 1, 1], [], []>} : vector<8x128xf32>, vector<128x30xf32>, vector<8x30xf32> -> vector<8x30xf32>
    %c0_37 = arith.constant 0 : index
    %c0_38 = arith.constant 0 : index
    %36 = vector.load %arg16[%c0_37, %c0_38] : memref<1x30xf32, #tpu.memory_space<vmem>>, vector<1x30xf32>
    %37 = vector.broadcast %36 : vector<1x30xf32> to vector<8x30xf32>
    %38 = arith.addf %35, %37 : vector<8x30xf32>
    %c0_39 = arith.constant 0 : index
    %c0_40 = arith.constant 0 : index
    %39 = vector.load %arg17[%c0_39, %c0_40] : memref<30x2xf32, #tpu.memory_space<vmem>>, vector<30x2xf32>
    %cst_41 = arith.constant dense<0.000000e+00> : vector<8x2xf32>
    %40 = tpu.matmul %38, %39, %cst_41 {dimension_numbers = #tpu.dot_dimension_numbers<[1], [0], [0], [1], [0, 0, 1, 1], [], []>} : vector<8x30xf32>, vector<30x2xf32>, vector<8x2xf32> -> vector<8x2xf32>
    %c0_42 = arith.constant 0 : index
    %c0_43 = arith.constant 0 : index
    %41 = vector.load %arg18[%c0_42, %c0_43] : memref<1x2xf32, #tpu.memory_space<vmem>>, vector<1x2xf32>
    %42 = vector.broadcast %41 : vector<1x2xf32> to vector<8x2xf32>
    %43 = arith.addf %40, %42 : vector<8x2xf32>
    %cst_44 = arith.constant dense<0xFF800000> : vector<8xf32>
    %44 = vector.multi_reduction <maximumf>, %43, %cst_44 [1] : vector<8x2xf32> to vector<8xf32>
    %45 = vector.shape_cast %44 : vector<8xf32> to vector<8x1xf32>
    %46 = vector.broadcast %45 : vector<8x1xf32> to vector<8x2xf32>
    %47 = arith.subf %43, %46 : vector<8x2xf32>
    %48 = math.exp %47 : vector<8x2xf32>
    %cst_45 = arith.constant dense<0.000000e+00> : vector<8xf32>
    %49 = vector.multi_reduction <add>, %48, %cst_45 [1] : vector<8x2xf32> to vector<8xf32>
    %50 = vector.shape_cast %49 : vector<8xf32> to vector<8x1xf32>
    %51 = vector.broadcast %50 : vector<8x1xf32> to vector<8x2xf32>
    %52 = arith.divf %48, %51 : vector<8x2xf32>
    %c0_46 = arith.constant 0 : index
    %c0_47 = arith.constant 0 : index
    %53 = vector.load %arg25[%c0_46, %c0_47] : memref<8x2xf32, #tpu.memory_space<vmem>>, vector<8x2xf32>
    tpu.vector_store %arg25[%c0_46, %c0_47], %52 {strides = array<i32>} : memref<8x2xf32, #tpu.memory_space<vmem>>, vector<8x2xf32>,
    %cst_48 = arith.constant dense<0.000000e+00> : vector<8x32xf32>
    %54 = tpu.matmul %27, %6, %cst_48 {dimension_numbers = #tpu.dot_dimension_numbers<[1], [0], [0], [1], [0, 0, 1, 1], [], []>} : vector<8x64xf32>, vector<64x32xf32>, vector<8x32xf32> -> vector<8x32xf32>
    %cst_49 = arith.constant dense<0.000000e+00> : vector<8x32xf32>
    %55 = tpu.matmul %27, %11, %cst_49 {dimension_numbers = #tpu.dot_dimension_numbers<[1], [0], [0], [1], [0, 0, 1, 1], [], []>} : vector<8x64xf32>, vector<64x32xf32>, vector<8x32xf32> -> vector<8x32xf32>
    %c0_50 = arith.constant 0 : index
    %c0_51 = arith.constant 0 : index
    %56 = vector.load %arg19[%c0_50, %c0_51] : memref<32x128xf32, #tpu.memory_space<vmem>>, vector<32x128xf32>
    %cst_52 = arith.constant dense<0.000000e+00> : vector<8x128xf32>
    %57 = tpu.matmul %54, %56, %cst_52 {dimension_numbers = #tpu.dot_dimension_numbers<[1], [0], [0], [1], [0, 0, 1, 1], [], []>} : vector<8x32xf32>, vector<32x128xf32>, vector<8x128xf32> -> vector<8x128xf32>
    %c0_53 = arith.constant 0 : index
    %c0_54 = arith.constant 0 : index
    %58 = vector.load %arg20[%c0_53, %c0_54] : memref<1x128xf32, #tpu.memory_space<vmem>>, vector<1x128xf32>
    %59 = vector.broadcast %58 : vector<1x128xf32> to vector<8x128xf32>
    %60 = arith.addf %57, %59 : vector<8x128xf32>
    %cst_55 = arith.constant 0.000000e+00 : f32
    %61 = vector.broadcast %cst_55 : f32 to vector<8x128xf32>
    %62 = arith.cmpf oge, %60, %61 : vector<8x128xf32>
    %cst_56 = arith.constant 0.00999999977 : f32
    %63 = vector.broadcast %cst_56 : f32 to vector<8x128xf32>
    %64 = arith.mulf %63, %60 : vector<8x128xf32>
    %65 = arith.select %62, %60, %64 : vector<8x128xi1>, vector<8x128xf32>
    %c0_57 = arith.constant 0 : index
    %c0_58 = arith.constant 0 : index
    %66 = vector.load %arg21[%c0_57, %c0_58] : memref<128x30xf32, #tpu.memory_space<vmem>>, vector<128x30xf32>
    %cst_59 = arith.constant dense<0.000000e+00> : vector<8x30xf32>
    %67 = tpu.matmul %65, %66, %cst_59 {dimension_numbers = #tpu.dot_dimension_numbers<[1], [0], [0], [1], [0, 0, 1, 1], [], []>} : vector<8x128xf32>, vector<128x30xf32>, vector<8x30xf32> -> vector<8x30xf32>
    %c0_60 = arith.constant 0 : index
    %c0_61 = arith.constant 0 : index
    %68 = vector.load %arg22[%c0_60, %c0_61] : memref<1x30xf32, #tpu.memory_space<vmem>>, vector<1x30xf32>
    %69 = vector.broadcast %68 : vector<1x30xf32> to vector<8x30xf32>
    %70 = arith.addf %67, %69 : vector<8x30xf32>
    %cst_62 = arith.constant 0.000000e+00 : f32
    %71 = vector.broadcast %cst_62 : f32 to vector<8x30xf32>
    %72 = arith.cmpf oge, %70, %71 : vector<8x30xf32>
    %cst_63 = arith.constant 0.00999999977 : f32
    %73 = vector.broadcast %cst_63 : f32 to vector<8x30xf32>
    %74 = arith.mulf %73, %70 : vector<8x30xf32>
    %75 = arith.select %72, %70, %74 : vector<8x30xi1>, vector<8x30xf32>
    %c0_64 = arith.constant 0 : index
    %c0_65 = arith.constant 0 : index
    %76 = vector.load %arg23[%c0_64, %c0_65] : memref<30x2xf32, #tpu.memory_space<vmem>>, vector<30x2xf32>
    %cst_66 = arith.constant dense<0.000000e+00> : vector<8x2xf32>
    %77 = tpu.matmul %75, %76, %cst_66 {dimension_numbers = #tpu.dot_dimension_numbers<[1], [0], [0], [1], [0, 0, 1, 1], [], []>} : vector<8x30xf32>, vector<30x2xf32>, vector<8x2xf32> -> vector<8x2xf32>
    %c0_67 = arith.constant 0 : index
    %c0_68 = arith.constant 0 : index
    %78 = vector.load %arg24[%c0_67, %c0_68] : memref<1x2xf32, #tpu.memory_space<vmem>>, vector<1x2xf32>
    %79 = vector.broadcast %78 : vector<1x2xf32> to vector<8x2xf32>
    %80 = arith.addf %77, %79 : vector<8x2xf32>
    %cst_69 = arith.constant 0.000000e+00 : f32
    %81 = vector.broadcast %cst_69 : f32 to vector<8x2xf32>
    %82 = arith.cmpf oge, %80, %81 : vector<8x2xf32>
    %cst_70 = arith.constant 0.00999999977 : f32
    %83 = vector.broadcast %cst_70 : f32 to vector<8x2xf32>
    %84 = arith.mulf %83, %80 : vector<8x2xf32>
    %85 = arith.select %82, %80, %84 : vector<8x2xi1>, vector<8x2xf32>
    %cst_71 = arith.constant 1.000000e+00 : f32
    %86 = vector.broadcast %cst_71 : f32 to vector<8x2xf32>
    %87 = arith.mulf %85, %86 : vector<8x2xf32>
    %cst_72 = arith.constant dense<0xFF800000> : vector<8xf32>
    %88 = vector.multi_reduction <maximumf>, %87, %cst_72 [1] : vector<8x2xf32> to vector<8xf32>
    %89 = vector.shape_cast %88 : vector<8xf32> to vector<8x1xf32>
    %90 = vector.broadcast %89 : vector<8x1xf32> to vector<8x2xf32>
    %91 = arith.subf %87, %90 : vector<8x2xf32>
    %92 = math.exp %91 : vector<8x2xf32>
    %cst_73 = arith.constant dense<0.000000e+00> : vector<8xf32>
    %93 = vector.multi_reduction <add>, %92, %cst_73 [1] : vector<8x2xf32> to vector<8xf32>
    %94 = vector.shape_cast %93 : vector<8xf32> to vector<8x1xf32>
    %95 = vector.broadcast %94 : vector<8x1xf32> to vector<8x2xf32>
    %96 = arith.divf %92, %95 : vector<8x2xf32>
    %c0_74 = arith.constant 0 : index
    %c0_75 = arith.constant 0 : index
    %97 = vector.load %arg26[%c0_74, %c0_75] : memref<8x2xf32, #tpu.memory_space<vmem>>, vector<8x2xf32>
    tpu.vector_store %arg26[%c0_74, %c0_75], %96 {strides = array<i32>} : memref<8x2xf32, #tpu.memory_space<vmem>>, vector<8x2xf32>,
    %c0_76 = arith.constant 0 : index
    %c0_77 = arith.constant 0 : index
    %98 = vector.load %arg19[%c0_76, %c0_77] : memref<32x128xf32, #tpu.memory_space<vmem>>, vector<32x128xf32>
    %cst_78 = arith.constant dense<0.000000e+00> : vector<8x128xf32>
    %99 = tpu.matmul %55, %98, %cst_78 {dimension_numbers = #tpu.dot_dimension_numbers<[1], [0], [0], [1], [0, 0, 1, 1], [], []>} : vector<8x32xf32>, vector<32x128xf32>, vector<8x128xf32> -> vector<8x128xf32>
    %c0_79 = arith.constant 0 : index
    %c0_80 = arith.constant 0 : index
    %100 = vector.load %arg20[%c0_79, %c0_80] : memref<1x128xf32, #tpu.memory_space<vmem>>, vector<1x128xf32>
    %101 = vector.broadcast %100 : vector<1x128xf32> to vector<8x128xf32>
    %102 = arith.addf %99, %101 : vector<8x128xf32>
    %cst_81 = arith.constant 0.000000e+00 : f32
    %103 = vector.broadcast %cst_81 : f32 to vector<8x128xf32>
    %104 = arith.cmpf oge, %102, %103 : vector<8x128xf32>
    %cst_82 = arith.constant 0.00999999977 : f32
    %105 = vector.broadcast %cst_82 : f32 to vector<8x128xf32>
    %106 = arith.mulf %105, %102 : vector<8x128xf32>
    %107 = arith.select %104, %102, %106 : vector<8x128xi1>, vector<8x128xf32>
    %c0_83 = arith.constant 0 : index
    %c0_84 = arith.constant 0 : index
    %108 = vector.load %arg21[%c0_83, %c0_84] : memref<128x30xf32, #tpu.memory_space<vmem>>, vector<128x30xf32>
    %cst_85 = arith.constant dense<0.000000e+00> : vector<8x30xf32>
    %109 = tpu.matmul %107, %108, %cst_85 {dimension_numbers = #tpu.dot_dimension_numbers<[1], [0], [0], [1], [0, 0, 1, 1], [], []>} : vector<8x128xf32>, vector<128x30xf32>, vector<8x30xf32> -> vector<8x30xf32>
    %c0_86 = arith.constant 0 : index
    %c0_87 = arith.constant 0 : index
    %110 = vector.load %arg22[%c0_86, %c0_87] : memref<1x30xf32, #tpu.memory_space<vmem>>, vector<1x30xf32>
    %111 = vector.broadcast %110 : vector<1x30xf32> to vector<8x30xf32>
    %112 = arith.addf %109, %111 : vector<8x30xf32>
    %cst_88 = arith.constant 0.000000e+00 : f32
    %113 = vector.broadcast %cst_88 : f32 to vector<8x30xf32>
    %114 = arith.cmpf oge, %112, %113 : vector<8x30xf32>
    %cst_89 = arith.constant 0.00999999977 : f32
    %115 = vector.broadcast %cst_89 : f32 to vector<8x30xf32>
    %116 = arith.mulf %115, %112 : vector<8x30xf32>
    %117 = arith.select %114, %112, %116 : vector<8x30xi1>, vector<8x30xf32>
    %c0_90 = arith.constant 0 : index
    %c0_91 = arith.constant 0 : index
    %118 = vector.load %arg23[%c0_90, %c0_91] : memref<30x2xf32, #tpu.memory_space<vmem>>, vector<30x2xf32>
    %cst_92 = arith.constant dense<0.000000e+00> : vector<8x2xf32>
    %119 = tpu.matmul %117, %118, %cst_92 {dimension_numbers = #tpu.dot_dimension_numbers<[1], [0], [0], [1], [0, 0, 1, 1], [], []>} : vector<8x30xf32>, vector<30x2xf32>, vector<8x2xf32> -> vector<8x2xf32>
    %c0_93 = arith.constant 0 : index
    %c0_94 = arith.constant 0 : index
    %120 = vector.load %arg24[%c0_93, %c0_94] : memref<1x2xf32, #tpu.memory_space<vmem>>, vector<1x2xf32>
    %121 = vector.broadcast %120 : vector<1x2xf32> to vector<8x2xf32>
    %122 = arith.addf %119, %121 : vector<8x2xf32>
    %cst_95 = arith.constant 0.000000e+00 : f32
    %123 = vector.broadcast %cst_95 : f32 to vector<8x2xf32>
    %124 = arith.cmpf oge, %122, %123 : vector<8x2xf32>
    %cst_96 = arith.constant 0.00999999977 : f32
    %125 = vector.broadcast %cst_96 : f32 to vector<8x2xf32>
    %126 = arith.mulf %125, %122 : vector<8x2xf32>
    %127 = arith.select %124, %122, %126 : vector<8x2xi1>, vector<8x2xf32>
    %cst_97 = arith.constant 1.000000e+00 : f32
    %128 = vector.broadcast %cst_97 : f32 to vector<8x2xf32>
    %129 = arith.mulf %127, %128 : vector<8x2xf32>
    %cst_98 = arith.constant dense<0xFF800000> : vector<8xf32>
    %130 = vector.multi_reduction <maximumf>, %129, %cst_98 [1] : vector<8x2xf32> to vector<8xf32>
    %131 = vector.shape_cast %130 : vector<8xf32> to vector<8x1xf32>
    %132 = vector.broadcast %131 : vector<8x1xf32> to vector<8x2xf32>
    %133 = arith.subf %129, %132 : vector<8x2xf32>
    %134 = math.exp %133 : vector<8x2xf32>
    %cst_99 = arith.constant dense<0.000000e+00> : vector<8xf32>
    %135 = vector.multi_reduction <add>, %134, %cst_99 [1] : vector<8x2xf32> to vector<8xf32>
    %136 = vector.shape_cast %135 : vector<8xf32> to vector<8x1xf32>
    %137 = vector.broadcast %136 : vector<8x1xf32> to vector<8x2xf32>
    %138 = arith.divf %134, %137 : vector<8x2xf32>
    %c0_100 = arith.constant 0 : index
    %c0_101 = arith.constant 0 : index
    %139 = vector.load %arg27[%c0_100, %c0_101] : memref<8x2xf32, #tpu.memory_space<vmem>>, vector<8x2xf32>
    tpu.vector_store %arg27[%c0_100, %c0_101], %138 {strides = array<i32>} : memref<8x2xf32, #tpu.memory_space<vmem>>, vector<8x2xf32>,
    return
  }
  func.func @transform_0(%arg0: i32) -> (i32, i32) {
    %c0_i32 = arith.constant 0 : i32
    %c0_i32_0 = arith.constant 0 : i32
    return %arg0, %c0_i32 : i32, i32
  }
  func.func @transform_1(%arg0: i32) -> (i32, i32) {
    %c0_i32 = arith.constant 0 : i32
    %c0_i32_0 = arith.constant 0 : i32
    return %arg0, %c0_i32 : i32, i32
  }
  func.func @transform_2(%arg0: i32) -> (i32, i32) {
    %c0_i32 = arith.constant 0 : i32
    %c0_i32_0 = arith.constant 0 : i32
    %c0_i32_1 = arith.constant 0 : i32
    return %c0_i32, %c0_i32_0 : i32, i32
  }
  func.func @transform_3(%arg0: i32) -> (i32, i32) {
    %c0_i32 = arith.constant 0 : i32
    %c0_i32_0 = arith.constant 0 : i32
    %c0_i32_1 = arith.constant 0 : i32
    return %c0_i32, %c0_i32_0 : i32, i32
  }
  func.func @transform_4(%arg0: i32) -> (i32, i32) {
    %c0_i32 = arith.constant 0 : i32
    %c0_i32_0 = arith.constant 0 : i32
    %c0_i32_1 = arith.constant 0 : i32
    return %c0_i32, %c0_i32_0 : i32, i32
  }
  func.func @transform_5(%arg0: i32) -> (i32, i32) {
    %c0_i32 = arith.constant 0 : i32
    %c0_i32_0 = arith.constant 0 : i32
    %c0_i32_1 = arith.constant 0 : i32
    return %c0_i32, %c0_i32_0 : i32, i32
  }
  func.func @transform_6(%arg0: i32) -> (i32, i32) {
    %c0_i32 = arith.constant 0 : i32
    %c0_i32_0 = arith.constant 0 : i32
    %c0_i32_1 = arith.constant 0 : i32
    return %c0_i32, %c0_i32_0 : i32, i32
  }
  func.func @transform_7(%arg0: i32) -> (i32, i32) {
    %c0_i32 = arith.constant 0 : i32
    %c0_i32_0 = arith.constant 0 : i32
    %c0_i32_1 = arith.constant 0 : i32
    return %c0_i32, %c0_i32_0 : i32, i32
  }
  func.func @transform_8(%arg0: i32) -> (i32, i32) {
    %c0_i32 = arith.constant 0 : i32
    %c0_i32_0 = arith.constant 0 : i32
    %c0_i32_1 = arith.constant 0 : i32
    return %c0_i32, %c0_i32_0 : i32, i32
  }
  func.func @transform_9(%arg0: i32) -> (i32, i32) {
    %c0_i32 = arith.constant 0 : i32
    %c0_i32_0 = arith.constant 0 : i32
    %c0_i32_1 = arith.constant 0 : i32
    return %c0_i32, %c0_i32_0 : i32, i32
  }
  func.func @transform_10(%arg0: i32) -> (i32, i32) {
    %c0_i32 = arith.constant 0 : i32
    %c0_i32_0 = arith.constant 0 : i32
    %c0_i32_1 = arith.constant 0 : i32
    return %c0_i32, %c0_i32_0 : i32, i32
  }
  func.func @transform_11(%arg0: i32) -> (i32, i32) {
    %c0_i32 = arith.constant 0 : i32
    %c0_i32_0 = arith.constant 0 : i32
    %c0_i32_1 = arith.constant 0 : i32
    return %c0_i32, %c0_i32_0 : i32, i32
  }
  func.func @transform_12(%arg0: i32) -> (i32, i32) {
    %c0_i32 = arith.constant 0 : i32
    %c0_i32_0 = arith.constant 0 : i32
    %c0_i32_1 = arith.constant 0 : i32
    return %c0_i32, %c0_i32_0 : i32, i32
  }
  func.func @transform_13(%arg0: i32) -> (i32, i32) {
    %c0_i32 = arith.constant 0 : i32
    %c0_i32_0 = arith.constant 0 : i32
    %c0_i32_1 = arith.constant 0 : i32
    return %c0_i32, %c0_i32_0 : i32, i32
  }
  func.func @transform_14(%arg0: i32) -> (i32, i32) {
    %c0_i32 = arith.constant 0 : i32
    %c0_i32_0 = arith.constant 0 : i32
    %c0_i32_1 = arith.constant 0 : i32
    return %c0_i32, %c0_i32_0 : i32, i32
  }
  func.func @transform_15(%arg0: i32) -> (i32, i32) {
    %c0_i32 = arith.constant 0 : i32
    %c0_i32_0 = arith.constant 0 : i32
    %c0_i32_1 = arith.constant 0 : i32
    return %c0_i32, %c0_i32_0 : i32, i32
  }
  func.func @transform_16(%arg0: i32) -> (i32, i32) {
    %c0_i32 = arith.constant 0 : i32
    %c0_i32_0 = arith.constant 0 : i32
    %c0_i32_1 = arith.constant 0 : i32
    return %c0_i32, %c0_i32_0 : i32, i32
  }
  func.func @transform_17(%arg0: i32) -> (i32, i32) {
    %c0_i32 = arith.constant 0 : i32
    %c0_i32_0 = arith.constant 0 : i32
    %c0_i32_1 = arith.constant 0 : i32
    return %c0_i32, %c0_i32_0 : i32, i32
  }
  func.func @transform_18(%arg0: i32) -> (i32, i32) {
    %c0_i32 = arith.constant 0 : i32
    %c0_i32_0 = arith.constant 0 : i32
    %c0_i32_1 = arith.constant 0 : i32
    return %c0_i32, %c0_i32_0 : i32, i32
  }
  func.func @transform_19(%arg0: i32) -> (i32, i32) {
    %c0_i32 = arith.constant 0 : i32
    %c0_i32_0 = arith.constant 0 : i32
    %c0_i32_1 = arith.constant 0 : i32
    return %c0_i32, %c0_i32_0 : i32, i32
  }
  func.func @transform_20(%arg0: i32) -> (i32, i32) {
    %c0_i32 = arith.constant 0 : i32
    %c0_i32_0 = arith.constant 0 : i32
    %c0_i32_1 = arith.constant 0 : i32
    return %c0_i32, %c0_i32_0 : i32, i32
  }
  func.func @transform_21(%arg0: i32) -> (i32, i32) {
    %c0_i32 = arith.constant 0 : i32
    %c0_i32_0 = arith.constant 0 : i32
    %c0_i32_1 = arith.constant 0 : i32
    return %c0_i32, %c0_i32_0 : i32, i32
  }
  func.func @transform_22(%arg0: i32) -> (i32, i32) {
    %c0_i32 = arith.constant 0 : i32
    %c0_i32_0 = arith.constant 0 : i32
    %c0_i32_1 = arith.constant 0 : i32
    return %c0_i32, %c0_i32_0 : i32, i32
  }
  func.func @transform_23(%arg0: i32) -> (i32, i32) {
    %c0_i32 = arith.constant 0 : i32
    %c0_i32_0 = arith.constant 0 : i32
    %c0_i32_1 = arith.constant 0 : i32
    return %c0_i32, %c0_i32_0 : i32, i32
  }
  func.func @transform_24(%arg0: i32) -> (i32, i32) {
    %c0_i32 = arith.constant 0 : i32
    %c0_i32_0 = arith.constant 0 : i32
    return %arg0, %c0_i32 : i32, i32
  }
  func.func @transform_25(%arg0: i32) -> (i32, i32) {
    %c0_i32 = arith.constant 0 : i32
    %c0_i32_0 = arith.constant 0 : i32
    return %arg0, %c0_i32 : i32, i32
  }
  func.func @transform_26(%arg0: i32) -> (i32, i32) {
    %c0_i32 = arith.constant 0 : i32
    %c0_i32_0 = arith.constant 0 : i32
    return %arg0, %c0_i32 : i32, i32
  }
}

</mosaic_0001>

<bundles_post_ra>
// kernel: tpu_custom_call.1
= control target key start
LH: loop header
LB: loop body
LE: loop exit
PB: predicated region body
PF: predicated region fallthrough
CT: control target
= control target key end

     0   :  { %s3511_s27 = smov 0   ;;  %s4193_s0 = inlined_call_operand.vmem [shape: f32[128,16], index: 0, kind: input, shape index: {}]   ;;  %s4194_s1 = inlined_call_operand.vmem [shape: f32[128,16], index: 1, kind: input, shape index: {}]   ;;  %s4195_s2 = inlined_call_operand.vmem [shape: f32[8,64], index: 2, kind: input, shape index: {}]   ;;  %s4196_s3 = inlined_call_operand.vmem [shape: f32[16,32], index: 3, kind: input, shape index: {}]   ;;  %s4197_s4 = inlined_call_operand.vmem [shape: f32[1,32], index: 4, kind: input, shape index: {}]   ;;  %s4198_s5 = inlined_call_operand.vmem [shape: f32[16,32], index: 5, kind: input, shape index: {}]   ;;  %s4199_s6 = inlined_call_operand.vmem [shape: f32[1,32], index: 6, kind: input, shape index: {}]   ;;  %s4200_s7 = inlined_call_operand.vmem [shape: f32[32,128], index: 7, kind: input, shape index: {}]   ;;  %s4201_s8 = inlined_call_operand.vmem [shape: f32[32,128], index: 8, kind: input, shape index: {}]   ;;  %s4202_s9 = inlined_call_operand.vmem [shape: f32[1,128], index: 9, kind: input, shape index: {}]   ;;  %s4203_s10 = inlined_call_operand.vmem [shape: f32[128,64], index: 10, kind: input, shape index: {}]   ;;  %s4204_s11 = inlined_call_operand.vmem [shape: f32[1,64], index: 11, kind: input, shape index: {}]   ;;  %s4205_s12 = inlined_call_operand.vmem [shape: f32[64,128], index: 12, kind: input, shape index: {}]   ;;  %s4206_s13 = inlined_call_operand.vmem [shape: f32[1,128], index: 13, kind: input, shape index: {}]   ;;  %s4207_s14 = inlined_call_operand.vmem [shape: f32[128,30], index: 14, kind: input, shape index: {}]   ;;  %s4208_s15 = inlined_call_operand.vmem [shape: f32[1,30], index: 15, kind: input, shape index: {}]   ;;  %s4209_s16 = inlined_call_operand.vmem [shape: f32[30,2], index: 16, kind: input, shape index: {}]   ;;  %s4210_s17 = inlined_call_operand.vmem [shape: f32[1,2], index: 17, kind: input, shape index: {}]   ;;  %s4211_s18 = inlined_call_operand.vmem [shape: f32[32,128], index: 18, kind: input, shape index: {}]   ;;  %s4212_s19 = inlined_call_operand.vmem [shape: f32[1,128], index: 19, kind: input, shape index: {}]   ;;  %s4213_s20 = inlined_call_operand.vmem [shape: f32[128,30], index: 20, kind: input, shape index: {}]   ;;  %s4214_s21 = inlined_call_operand.vmem [shape: f32[1,30], index: 21, kind: input, shape index: {}]   ;;  %s4215_s22 = inlined_call_operand.vmem [shape: f32[30,2], index: 22, kind: input, shape index: {}]   ;;  %s4216_s23 = inlined_call_operand.vmem [shape: f32[1,2], index: 23, kind: input, shape index: {}]   ;;  %s4217_s24 = inlined_call_operand.vmem [shape: f32[16,2], index: 24, kind: output, shape index: {0}]   ;;  %s4218_s25 = inlined_call_operand.vmem [shape: f32[16,2], index: 25, kind: output, shape index: {1}]   ;;  %s4219_s26 = inlined_call_operand.vmem [shape: f32[16,2], index: 26, kind: output, shape index: {2}]  }
   0x1   :  { %4227 = sst [smem:[#allocation2_spill]] %s4193_s0 }
   0x2   :  { %4228 = sst [smem:[#allocation3_spill]] %s4194_s1 }
   0x3   :  { %4229 = sst [smem:[#allocation4_spill]] %s4195_s2 }
   0x4   :  { %4230 = sst [smem:[#allocation5_spill]] %s4196_s3 }
   0x5   :  { %4231 = sst [smem:[#allocation6_spill]] %s4197_s4 }
   0x6   :  { %4232 = sst [smem:[#allocation7_spill]] %s4198_s5 }
   0x7   :  { %4233 = sst [smem:[#allocation8_spill]] %s4199_s6 }
   0x8   :  { %4234 = sst [smem:[#allocation9_spill]] %s4200_s7 }
   0x9   :  { %4235 = sst [smem:[#allocation10_spill]] %s4201_s8 }
   0xa   :  { %4236 = sst [smem:[#allocation11_spill]] %s4202_s9 }
   0xb   :  { %4237 = sst [smem:[#allocation12_spill]] %s4203_s10 }
   0xc LB: > { %s3517_s3 = sadd.s32 4294967295, %s3372_s27   ;;  %p2745_p0 = scmp.ge.s32.totalorder %s3372_s27, 1  ;;  %s3372_s27 = sphi %s3511_s27, %s37_s27  }
   0xd   : > { %p729_p1 = scmp.lt.s32.totalorder %s3372_s27, 3 }
   0xf   : > { %p730_p2 = pnand %p2745_p0, %p729_p1 }
  0x10   : > { %s4238_s8 = sld [smem:[#allocation5_spill]] (!%p730_p2)  ;;  %s2746_s2 = sshll.u32 (!%p730_p2), %s3517_s3, 3 }
  0x11   : > { %733 = sbr.rel (%p730_p2) target bundleno = 2756 (0xac4), region = 116  ;;  %s4239_s0 = sld [smem:[#allocation7_spill]] (!%p730_p2) }
  0x12   : > { %p812_p3 = scmp.lt.s32.totalorder (!%p730_p2), %s2746_s2, 15  ;;  %s4240_s7 = sld [smem:[#allocation10_spill]] (!%p730_p2) }
  0x13   : > { %s4241_s29 = sld [smem:[#allocation9_spill]] (!%p730_p2)  ;;  %p823_p4 = scmp.lt.s32.totalorder (!%p730_p2), %s3517_s3, 1 }
  0x14   : > { %s4242_s10 = sld [smem:[#allocation2_spill]] (!%p730_p2) }
  0x15   : > { %s4248_s6 = sld [smem:[#allocation4_spill]] (!%p730_p2) }
  0x16   : > { %v852_v0 = vld [vmem:[%s4238_s8 + $0x8] sm:$0xff]  ;;  %v851_v2 = vld [vmem:[%s4238_s8] sm:$0xff]  ;;  %s4250_s2 = smov (!%p812_p3, %s2746_s2), 15  ;;  %vm860_vm0 = vcmask 130048   ;;  %s4243_s8 = sld [smem:[#allocation3_spill]]  ;;  %vm1136_vm1 = vcmask 261120  }
  0x17   : > { %v991_v1 = vld [vmem:[%s4239_s0 + $0x8] sm:$0xff]  ;;  %2992 = vmatprep.subr.mxu0 %v852_v0  ;;  %v990_v3 = vld [vmem:[%s4239_s0] sm:$0xff]  ;;  %s2747_s9 = sshll.u32 %s4250_s2, 3  ;;  %vm3375_vm2 = vmmov 0   ;;  %vm1547_vm3 = vcmask 523264   ;;  %vm1817_vm4 = vcmask 1045504  }
  0x18   : > { %3008 = vmatprep.subr.mxu1 %v991_v1  ;;  %2993 = vmatpush3.msra.mxu0 %v852_v0  ;;  %v1135_v4 = vld [vmem:[%s4240_s7 + $0x18] sm:$0xff]  ;;  %v1134_v12 = vld [vmem:[%s4240_s7 + $0x10] sm:$0xff]  ;;  %v1133_v18 = vld [vmem:[%s4240_s7 + $0x8] sm:$0xff]  ;;  %vm1813_vm5 = vcmask 244736   ;;  %vm1891_vm6 = vcmask 15360   ;;  %s4252_s3 = smov (!%p823_p4, %s3517_s3), 1 }
  0x19   : > { %3009 = vmatpush3.msra.mxu1 %v991_v1  ;;  %v1131_v5 = vld [vmem:[%s4241_s29 + $0x18] sm:$0xff]  ;;  %2994 = vmatprep.subr.mxu0 %v851_v2  ;;  %v1130_v13 = vld [vmem:[%s4241_s29 + $0x10] sm:$0xff]  ;;  %v1129_v19 = vld [vmem:[%s4241_s29 + $0x8] sm:$0xff] }
  0x1a   : > { %3010 = vmatprep.subr.mxu1 %v990_v3  ;;  %2995 = vmatpush3.msra.mxu0 %v851_v2  ;;  %s3543_s0 = scalar_lea.vmem %s4242_s10, %s2747_s9  ;;  %v1132_v26 = vld [vmem:[%s4240_s7] sm:$0xff]  ;;  %s4245_s10 = sld [smem:[#allocation6_spill]] }
  0x1b   : > { %3011 = vmatpush3.msra.mxu1 %v990_v3  ;;  %3024 = vmatprep.subr.mxu0 %v1135_v4  ;;  %v835_v6 = vld [vmem:[%s3543_s0] sm:$0xff]  ;;  %v836_v8 = vld [vmem:[%s3543_s0 + $0x8] sm:$0xff]  ;;  %v837_v10 = vld [vmem:[%s3543_s0 + $0x10] sm:$0xff] }
  0x1c   : > { %3044 = vmatprep.subr.mxu1 %v1131_v5  ;;  %s3548_s28 = scalar_lea.vmem %s4243_s8, %s2747_s9  ;;  %2996 = vmatprep.mubr.msk.f32.mxu0 %vm860_vm0, %v835_v6  ;;  %v838_v14 = vld [vmem:[%s3543_s0 + $0x18] sm:$0xff]  ;;  %v839_v16 = vld [vmem:[%s3543_s0 + $0x20] sm:$0xff]  ;;  %v840_v20 = vld [vmem:[%s3543_s0 + $0x28] sm:$0xff]  ;;  %s4244_s9 = sld [smem:[#allocation12_spill]] }
  0x1d   : > { %v843_v7 = vld [vmem:[%s3548_s28] sm:$0xff]  ;;  %v844_v9 = vld [vmem:[%s3548_s28 + $0x8] sm:$0xff]  ;;  %v845_v11 = vld [vmem:[%s3548_s28 + $0x10] sm:$0xff]  ;;  %2997 = vmatmul.mubr.msk.f32.vlgmr.msra.gmra.mxu0 %vm860_vm0, %v836_v8  ;;  %s4246_s8 = sld [smem:[#allocation8_spill]] }
  0x1e   : > { %3012 = vmatprep.mubr.msk.f32.mxu1 %vm860_vm0, %v843_v7  ;;  %2999 = vmatprep.mubr.msk.f32.mxu0 %vm860_vm0, %v837_v10  ;;  %v846_v15 = vld [vmem:[%s3548_s28 + $0x18] sm:$0xff]  ;;  %v847_v17 = vld [vmem:[%s3548_s28 + $0x20] sm:$0xff]  ;;  %v848_v21 = vld [vmem:[%s3548_s28 + $0x28] sm:$0xff] }
  0x1f   : > { %3013 = vmatmul.mubr.msk.f32.vlgmr.msra.gmra.mxu1 %vm860_vm0, %v844_v9  ;;  %3025 = vmatpush3.msra.mxu0 %v1135_v4  ;;  %v841_v22 = vld [vmem:[%s3543_s0 + $0x30] sm:$0xff]  ;;  %v842_v24 = vld [vmem:[%s3543_s0 + $0x38] sm:$0xff]  ;;  %v1128_v27 = vld [vmem:[%s4241_s29] sm:$0xff]  ;;  %s4247_s0 = sld [smem:[#allocation11_spill]] }
  0x20   : > { %3015 = vmatprep.mubr.msk.f32.mxu1 %vm860_vm0, %v845_v11  ;;  %3045 = vmatpush3.msra.mxu1 %v1131_v5  ;;  %v849_v23 = vld [vmem:[%s3548_s28 + $0x30] sm:$0xff]  ;;  %v850_v25 = vld [vmem:[%s3548_s28 + $0x38] sm:$0xff]  ;;  %v2753_v31 = vld [vmem:[%s4245_s10] ss:$0 sm:$0xff]  ;;  %s4169_s10 = sshll.u32 %s4252_s3, 3 }
  0x21   : > { %3026 = vmatprep.subr.mxu0 %v1134_v12  ;;  %3046 = vmatprep.subr.mxu1 %v1130_v13  ;;  %s826_s4 = scalar_lea.vmem %s4217_s24, %s4169_s10  ;;  %s834_s30 = scalar_lea.vmem %s4219_s26, %s4169_s10 }
  0x22   : > { %3000 = vmatmul.mubr.msk.f32.gmra.mxu0 %vm860_vm0, %v838_v14  ;;  %3047 = vmatpush3.msra.mxu1 %v1130_v13  ;;  %v1433_v28 = vld [vmem:[%s4244_s9 + $0x78] sm:$0xff]  ;;  %v1432_v41 = vld [vmem:[%s4244_s9 + $0x70] sm:$0xff]  ;;  %v1431_v50 = vld [vmem:[%s4244_s9 + $0x68] sm:$0xff] }
  0x23   : > { %3016 = vmatmul.mubr.msk.f32.gmra.mxu1 %vm860_vm0, %v846_v15  ;;  %3002 = vmatprep.mubr.msk.f32.mxu0 %vm860_vm0, %v839_v16  ;;  %v2762_v32 = vld [vmem:[%s4246_s8] ss:$0 sm:$0xff]  ;;  %v1429_v2 = vld [vmem:[%s4244_s9 + $0x58] sm:$0xff]  ;;  %v1428_v3 = vld [vmem:[%s4244_s9 + $0x50] sm:$0xff]  ;;  %s830_s8 = scalar_lea.vmem %s4218_s25, %s4169_s10 }
  0x24   : > { %3018 = vmatprep.mubr.msk.f32.mxu1 %vm860_vm0, %v847_v17  ;;  %3027 = vmatpush3.msra.mxu0 %v1134_v12  ;;  %v1430_v59 = vld [vmem:[%s4244_s9 + $0x60] sm:$0xff]  ;;  %v1427_v4 = vld [vmem:[%s4244_s9 + $0x48] sm:$0xff]  ;;  %v1425_v6 = vld [vmem:[%s4244_s9 + $0x38] sm:$0xff] }
  0x25   : > { %3028 = vmatprep.subr.mxu0 %v1133_v18  ;;  %3048 = vmatprep.subr.mxu1 %v1129_v19  ;;  %v1426_v5 = vld [vmem:[%s4244_s9 + $0x40] sm:$0xff]  ;;  %v1424_v7 = vld [vmem:[%s4244_s9 + $0x30] sm:$0xff]  ;;  %v1423_v8 = vld [vmem:[%s4244_s9 + $0x28] sm:$0xff] }
  0x26   : > { %3003 = vmatmul.mubr.msk.f32.gmra.mxu0 %vm860_vm0, %v840_v20  ;;  %3049 = vmatpush3.msra.mxu1 %v1129_v19  ;;  %v1422_v9 = vld [vmem:[%s4244_s9 + $0x20] sm:$0xff]  ;;  %v1421_v10 = vld [vmem:[%s4244_s9 + $0x18] sm:$0xff]  ;;  %v1420_v11 = vld [vmem:[%s4244_s9 + $0x10] sm:$0xff] }
  0x27   : > { %3019 = vmatmul.mubr.msk.f32.gmra.mxu1 %vm860_vm0, %v848_v21  ;;  %3005 = vmatprep.mubr.msk.f32.mxu0 %vm860_vm0, %v841_v22  ;;  %v1419_v12 = vld [vmem:[%s4244_s9 + $0x8] sm:$0xff]  ;;  %v1418_v13 = vld [vmem:[%s4244_s9] sm:$0xff] }
  0x28   : > { %3021 = vmatprep.mubr.msk.f32.mxu1 %vm860_vm0, %v849_v23  ;;  %3029 = vmatpush3.msra.mxu0 %v1133_v18  ;;  %v2787_v17 = vld [vmem:[%s4247_s0] ss:$0 sm:$0xff] }
  0x29   : > { %3030 = vmatprep.subr.mxu0 %v1132_v26  ;;  %3050 = vmatprep.subr.mxu1 %v1128_v27 }
  0x2a   : > { %3006 = vmatmul.mubr.msk.f32.gmra.mxu0 %vm860_vm0, %v842_v24  ;;  %3051 = vmatpush3.msra.mxu1 %v1128_v27 }
  0x2b   : > { %3022 = vmatmul.mubr.msk.f32.gmra.mxu1 %vm860_vm0, %v850_v25  ;;  %3031 = vmatpush3.msra.mxu0 %v1132_v26 }
  0x2c   : > { %3064 = vmatprep.subr.mxu0 %v1433_v28 }
  0xdd   : > { %v2998_v29 = vpop.f32.mrf.mxu0 }
  0xde   : > { %v3613_v37 = vadd.f32 %v2998_v29, %v2753_v31 }
  0xdf   : > { %v3014_v30 = vpop.f32.mrf.mxu1  ;;  %v951_v33 = vpop.f32.mrf.mxu0 }
  0xe0   : > { %v3609_v35 = vadd.f32 %v2753_v31, %v951_v33  ;;  %v3615_v38 = vadd.f32 %v3014_v30, %v2762_v32 }
  0xe1   : > { %v1089_v34 = vpop.f32.mrf.mxu1 }
  0xe2   : > { %v3611_v36 = vadd.f32 %v2762_v32, %v1089_v34  ;;  %v3001_v39 = vpop.f32.mrf.mxu0  ;;  %3052 = vmatprep.mubr.msk.f32.mxu1 %vm1136_vm1, %v3609_v35 }
  0xe3   : > { %v3017_v40 = vpop.f32.mrf.mxu1  ;;  %3053 = vmatmul.mubr.msk.f32.vlgmr.msra.gmra.mxu1 %vm1136_vm1, %v3613_v37  ;;  %v3632_v46 = vadd.f32 %v3001_v39, %v2753_v31 }
  0xe4   : > { %3032 = vmatprep.mubr.msk.f32.mxu0 %vm1136_vm1, %v3611_v36  ;;  %v961_v42 = vpop.f32.mrf.mxu0  ;;  %v3634_v47 = vadd.f32 %v3017_v40, %v2762_v32 }
  0xe5   : > { %v1099_v43 = vpop.f32.mrf.mxu1  ;;  %3033 = vmatmul.mubr.msk.f32.vlgmr.msra.gmra.mxu0 %vm1136_vm1, %v3615_v38  ;;  %v3628_v44 = vadd.f32 %v2753_v31, %v961_v42 }
  0xe6   : > { %v3630_v45 = vadd.f32 %v2762_v32, %v1099_v43  ;;  %3065 = vmatpush3.msra.mxu0 %v1433_v28  ;;  %v3004_v48 = vpop.f32.mrf.mxu0 }
  0xe7   : > { %v3020_v49 = vpop.f32.mrf.mxu1  ;;  %3066 = vmatprep.subr.mxu0 %v1432_v41  ;;  %3055 = vmatprep.mubr.msk.f32.mxu1 %vm1136_vm1, %v3628_v44  ;;  %v3651_v55 = vadd.f32 %v3004_v48, %v2753_v31 }
  0xe8   : > { %3035 = vmatprep.mubr.msk.f32.mxu0 %vm1136_vm1, %v3630_v45  ;;  %v971_v51 = vpop.f32.mrf.mxu0  ;;  %3056 = vmatmul.mubr.msk.f32.gmra.mxu1 %vm1136_vm1, %v3632_v46  ;;  %v3653_v56 = vadd.f32 %v3020_v49, %v2762_v32 }
  0xe9   : > { %v1109_v52 = vpop.f32.mrf.mxu1  ;;  %3036 = vmatmul.mubr.msk.f32.gmra.mxu0 %vm1136_vm1, %v3634_v47  ;;  %v3647_v53 = vadd.f32 %v2753_v31, %v971_v51 }
  0xea   : > { %v3649_v54 = vadd.f32 %v2762_v32, %v1109_v52  ;;  %3067 = vmatpush3.msra.mxu0 %v1432_v41  ;;  %v3007_v57 = vpop.f32.mrf.mxu0 }
  0xeb   : > { %v3023_v58 = vpop.f32.mrf.mxu1  ;;  %3068 = vmatprep.subr.mxu0 %v1431_v50  ;;  %3058 = vmatprep.mubr.msk.f32.mxu1 %vm1136_vm1, %v3647_v53  ;;  %v3670_v0 = vadd.f32 %v3007_v57, %v2753_v31 }
  0xec   : > { %3038 = vmatprep.mubr.msk.f32.mxu0 %vm1136_vm1, %v3649_v54  ;;  %v981_v60 = vpop.f32.mrf.mxu0  ;;  %3059 = vmatmul.mubr.msk.f32.gmra.mxu1 %vm1136_vm1, %v3651_v55  ;;  %v3672_v1 = vadd.f32 %v3023_v58, %v2762_v32 }
  0xed   : > { %v1119_v61 = vpop.f32.mrf.mxu1  ;;  %3039 = vmatmul.mubr.msk.f32.gmra.mxu0 %vm1136_vm1, %v3653_v56  ;;  %v3666_v62 = vadd.f32 %v2753_v31, %v981_v60 }
  0xee   : > { %v3668_v63 = vadd.f32 %v2762_v32, %v1119_v61  ;;  %3069 = vmatpush3.msra.mxu0 %v1431_v50 }
  0xef   : > { %3070 = vmatprep.subr.mxu0 %v1430_v59  ;;  %3061 = vmatprep.mubr.msk.f32.mxu1 %vm1136_vm1, %v3666_v62 }
  0xf0   : > { %3041 = vmatprep.mubr.msk.f32.mxu0 %vm1136_vm1, %v3668_v63  ;;  %3062 = vmatmul.mubr.msk.f32.gmra.mxu1 %vm1136_vm1, %v3670_v0 }
  0xf1   : > { %3042 = vmatmul.mubr.msk.f32.gmra.mxu0 %vm1136_vm1, %v3672_v1 }
  0xf2   : > { %3071 = vmatpush3.msra.mxu0 %v1430_v59 }
  0xf3   : > { %3072 = vmatprep.subr.mxu0 %v1429_v2 }
  0xf4   : > { %3073 = vmatpush3.msra.mxu0 %v1429_v2 }
  0xf5   : > { %3074 = vmatprep.subr.mxu0 %v1428_v3 }
  0xf6   : > { %3075 = vmatpush3.msra.mxu0 %v1428_v3 }
  0xf7   : > { %3076 = vmatprep.subr.mxu0 %v1427_v4 }
  0xf8   : > { %3077 = vmatpush3.msra.mxu0 %v1427_v4 }
  0xf9   : > { %3078 = vmatprep.subr.mxu0 %v1426_v5 }
  0xfa   : > { %3079 = vmatpush3.msra.mxu0 %v1426_v5 }
  0xfb   : > { %3080 = vmatprep.subr.mxu0 %v1425_v6 }
  0xfc   : > { %3081 = vmatpush3.msra.mxu0 %v1425_v6 }
  0xfd   : > { %3082 = vmatprep.subr.mxu0 %v1424_v7 }
  0xfe   : > { %3083 = vmatpush3.msra.mxu0 %v1424_v7  ;;  %v3374_v7 = vmov 0.0  }
  0xff   : > { %3084 = vmatprep.subr.mxu0 %v1423_v8  ;;  %3108 = vmatprep.subr.mxu1 %v3374_v7 }
 0x100   : > { %3085 = vmatpush3.msra.mxu0 %v1423_v8  ;;  %3124 = vmatprep.mubr.msk.f32.mxu1 %vm3375_vm2, %v3374_v7 }
 0x101   : > { %3086 = vmatprep.subr.mxu0 %v1422_v9 }
 0x102   : > { %3087 = vmatpush3.msra.mxu0 %v1422_v9 }
 0x103   : > { %3088 = vmatprep.subr.mxu0 %v1421_v10 }
 0x104   : > { %3089 = vmatpush3.msra.mxu0 %v1421_v10 }
 0x105   : > { %3090 = vmatprep.subr.mxu0 %v1420_v11 }
 0x106   : > { %3091 = vmatpush3.msra.mxu0 %v1420_v11 }
 0x107   : > { %3092 = vmatprep.subr.mxu0 %v1419_v12 }
 0x108   : > { %3093 = vmatpush3.msra.mxu0 %v1419_v12 }
 0x109   : > { %3094 = vmatprep.subr.mxu0 %v1418_v13 }
 0x10a   : > { %3095 = vmatpush3.msra.mxu0 %v1418_v13 }
 0x10b   : > { %3146 = vmatprep.subr.mxu0 %v3374_v7 }
 0x1a3   : > { %v3054_v15 = vpop.f32.mrf.mxu1 }
 0x1a5   : > { %v3034_v14 = vpop.f32.mrf.mxu0  ;;  %v1356_v19 = vpop.f32.mrf.mxu1 }
 0x1a6   : > { %v1362_v16 = vadd.f32 %v3054_v15, %v3034_v14  ;;  %v2788_v14 = vld [vmem:[%s4204_s11] ss:$0 sm:$0xff] }
 0x1a7   : > { %v1227_v18 = vpop.f32.mrf.mxu0 }
 0x1a8   : > { %v1357_v20 = vadd.f32 %v1356_v19, %v1227_v18  ;;  %v1403_v21 = vadd.f32 %v2787_v17, %v1362_v16  ;;  %v3057_v23 = vpop.f32.mrf.mxu1 }
 0x1a9   : > { %v3037_v22 = vpop.f32.mrf.mxu0 }
 0x1aa   : > { %v1402_v24 = vadd.f32 %v2787_v17, %v1357_v20  ;;  %v1372_v25 = vadd.f32 %v3057_v23, %v3037_v22  ;;  %v1366_v27 = vpop.f32.mrf.mxu1  ;;  %v1411_v30 = vmax.f32 %v1403_v21, 0.0 }
 0x1ab   : > { %v1237_v26 = vpop.f32.mrf.mxu0 }
 0x1ac   : > { %v1410_v28 = vmax.f32 %v1402_v24, 0.0  ;;  %v1367_v29 = vadd.f32 %v1366_v27, %v1237_v26  ;;  %v1405_v31 = vadd.f32 %v2787_v17, %v1372_v25  ;;  %v3060_v33 = vpop.f32.mrf.mxu1  ;;  %v3739_v25 = vld [vmem:[%s4248_s6] sm:$0xff]  ;;  %v1628_v26 = vld [vmem:[%s4205_s12 + $0x38] sm:$0xff]  ;;  %v1627_v27 = vld [vmem:[%s4205_s12 + $0x30] sm:$0xff] }
 0x1ad   : > { %v3040_v32 = vpop.f32.mrf.mxu0 }
 0x1ae   : > { %v1404_v34 = vadd.f32 %v2787_v17, %v1367_v29  ;;  %v1382_v39 = vadd.f32 %v3060_v33, %v3040_v32  ;;  %3096 = vmatprep.mubr.f32.mxu0 %v1410_v28  ;;  %v1376_v41 = vpop.f32.mrf.mxu1  ;;  %v1413_v48 = vmax.f32 %v1405_v31, 0.0  ;;  %v1626_v28 = vld [vmem:[%s4205_s12 + $0x28] sm:$0xff]  ;;  %v1625_v29 = vld [vmem:[%s4205_s12 + $0x20] sm:$0xff]  ;;  %v1623_v31 = vld [vmem:[%s4205_s12 + $0x10] sm:$0xff] }
 0x1af   : > { %v1247_v40 = vpop.f32.mrf.mxu0  ;;  %3097 = vmatmul.mubr.f32.vlgmr.msra.gmra.mxu0 %v1411_v30  ;;  %v1624_v30 = vld [vmem:[%s4205_s12 + $0x18] sm:$0xff]  ;;  %v1622_v32 = vld [vmem:[%s4205_s12 + $0x8] sm:$0xff]  ;;  %v1621_v33 = vld [vmem:[%s4205_s12] sm:$0xff] }
 0x1b0   : > { %v1412_v42 = vmax.f32 %v1404_v34, 0.0  ;;  %v1377_v43 = vadd.f32 %v1376_v41, %v1247_v40  ;;  %v1407_v49 = vadd.f32 %v2787_v17, %v1382_v39  ;;  %v3063_v51 = vpop.f32.mrf.mxu1  ;;  %v1724_v34 = vld [vmem:[%s4207_s14 + $0x78] sm:$0xff]  ;;  %v1723_v39 = vld [vmem:[%s4207_s14 + $0x70] sm:$0xff]  ;;  %v1722_v40 = vld [vmem:[%s4207_s14 + $0x68] sm:$0xff] }
 0x1b1   : > { %v3043_v50 = vpop.f32.mrf.mxu0  ;;  %3147 = vmatpush3.msra.mxu0 %v1724_v34  ;;  %v1721_v41 = vld [vmem:[%s4207_s14 + $0x60] sm:$0xff] }
 0x1b2   : > { %v1406_v52 = vadd.f32 %v2787_v17, %v1377_v43  ;;  %v1392_v57 = vadd.f32 %v3063_v51, %v3043_v50  ;;  %3099 = vmatprep.mubr.f32.mxu0 %v1412_v42  ;;  %v1386_v59 = vpop.f32.mrf.mxu1  ;;  %v1415_v2 = vmax.f32 %v1407_v49, 0.0  ;;  %3148 = vmatprep.subr.mxu0 %v3374_v7  ;;  %v1720_v42 = vld [vmem:[%s4207_s14 + $0x58] sm:$0xff]  ;;  %v1719_v43 = vld [vmem:[%s4207_s14 + $0x50] sm:$0xff]  ;;  %v1717_v49 = vld [vmem:[%s4207_s14 + $0x40] sm:$0xff] }
 0x1b3   : > { %v1257_v58 = vpop.f32.mrf.mxu0  ;;  %3100 = vmatmul.mubr.f32.gmra.mxu0 %v1413_v48  ;;  %v1718_v48 = vld [vmem:[%s4207_s14 + $0x48] sm:$0xff]  ;;  %v1716_v50 = vld [vmem:[%s4207_s14 + $0x38] sm:$0xff]  ;;  %v1715_v51 = vld [vmem:[%s4207_s14 + $0x30] sm:$0xff] }
 0x1b4   : > { %v1414_v60 = vmax.f32 %v1406_v52, 0.0  ;;  %v1387_v61 = vadd.f32 %v1386_v59, %v1257_v58  ;;  %v1409_v3 = vadd.f32 %v2787_v17, %v1392_v57  ;;  %3149 = vmatpush3.msra.mxu0 %v1723_v39  ;;  %v1714_v52 = vld [vmem:[%s4207_s14 + $0x28] sm:$0xff]  ;;  %v1713_v57 = vld [vmem:[%s4207_s14 + $0x20] sm:$0xff]  ;;  %v1712_v58 = vld [vmem:[%s4207_s14 + $0x18] sm:$0xff] }
 0x1b5   : > { %3150 = vmatprep.subr.mxu0 %v3374_v7  ;;  %v1711_v59 = vld [vmem:[%s4207_s14 + $0x10] sm:$0xff] }
 0x1b6   : > { %v1408_v4 = vadd.f32 %v2787_v17, %v1387_v61  ;;  %3102 = vmatprep.mubr.f32.mxu0 %v1414_v60  ;;  %v1417_v6 = vmax.f32 %v1409_v3, 0.0  ;;  %3151 = vmatpush3.msra.mxu0 %v1722_v40  ;;  %v1709_v3 = vld [vmem:[%s4207_s14] sm:$0xff]  ;;  %v4080_v39 = vld [vmem:[%s4215_s22 + $0x10] sm:$0xff]  ;;  %v4087_v40 = vld [vmem:[%s4215_s22 + $0x8] sm:$0xff] }
 0x1b7   : > { %3103 = vmatmul.mubr.f32.gmra.mxu0 %v1415_v2  ;;  %3152 = vmatprep.subr.mxu0 %v3374_v7  ;;  %v1710_v2 = vld [vmem:[%s4207_s14 + $0x8] sm:$0xff] }
 0x1b8   : > { %v1416_v5 = vmax.f32 %v1408_v4, 0.0  ;;  %3153 = vmatpush3.msra.mxu0 %v1721_v41  ;;  %v1805_v4 = vld [vmem:[%s4209_s16 + $0x18] sm:$0x3f]  ;;  %v4094_v41 = vld [vmem:[%s4215_s22] sm:$0xff] }
 0x1b9   : > { %3154 = vmatprep.subr.mxu0 %v3374_v7 }
 0x1ba   : > { %3105 = vmatprep.mubr.f32.mxu0 %v1416_v5  ;;  %3155 = vmatpush3.msra.mxu0 %v1720_v42  ;;  %v1804_v5 = vld [vmem:[%s4209_s16 + $0x10] sm:$0xff] }
 0x1bb   : > { %3106 = vmatmul.mubr.f32.gmra.mxu0 %v1417_v6  ;;  %3156 = vmatprep.subr.mxu0 %v3374_v7  ;;  %v1803_v6 = vld [vmem:[%s4209_s16 + $0x8] sm:$0xff] }
 0x1bc   : > { %3178 = vmatprep.mubr.msk.f32.mxu0 %vm3375_vm2, %v3374_v7  ;;  %3157 = vmatpush3.msra.mxu0 %v1719_v43 }
 0x1bd   : > { %3158 = vmatprep.subr.mxu0 %v3374_v7 }
 0x1be   : > { %3159 = vmatpush3.msra.mxu0 %v1718_v48  ;;  %v4101_v48 = vld [vmem:[%s4214_s21] ss:$0 sm:$0xff] }
 0x1bf   : > { %3160 = vmatprep.subr.mxu0 %v3374_v7 }
 0x1c0   : > { %3161 = vmatpush3.msra.mxu0 %v1717_v49 }
 0x1c1   : > { %3162 = vmatprep.subr.mxu0 %v3374_v7 }
 0x1c2   : > { %3163 = vmatpush3.msra.mxu0 %v1716_v50 }
 0x1c3   : > { %3164 = vmatprep.subr.mxu0 %v3374_v7 }
 0x1c4   : > { %3165 = vmatpush3.msra.mxu0 %v1715_v51 }
 0x1c5   : > { %3166 = vmatprep.subr.mxu0 %v3374_v7 }
 0x1c6   : > { %3167 = vmatpush3.msra.mxu0 %v1714_v52 }
 0x1c7   : > { %3168 = vmatprep.subr.mxu0 %v3374_v7 }
 0x1c8   : > { %3169 = vmatpush3.msra.mxu0 %v1713_v57 }
 0x1c9   : > { %3170 = vmatprep.subr.mxu0 %v3374_v7 }
 0x1ca   : > { %3171 = vmatpush3.msra.mxu0 %v1712_v58  ;;  %v2801_v58 = vld [vmem:[%s4216_s23] ss:$0 sm:$0xff] }
 0x1cb   : > { %3172 = vmatprep.subr.mxu0 %v3374_v7 }
 0x1cc   : > { %3173 = vmatpush3.msra.mxu0 %v1711_v59 }
 0x1cd   : > { %3174 = vmatprep.subr.mxu0 %v3374_v7 }
 0x1ce   : > { %3175 = vmatpush3.msra.mxu0 %v1710_v2 }
 0x1cf   : > { %3176 = vmatprep.subr.mxu0 %v3374_v7 }
 0x1d0   : > { %3177 = vmatpush3.msra.mxu0 %v1709_v3 }
 0x1d1   : > { %3230 = vmatprep.subr.mxu0 %v3374_v7 }
 0x26f   : > { %v3098_v8 = vpop.f32.mrf.mxu0 }
 0x270   : > { %v1513_v23 = vadd.f32 %v3098_v8, %v2788_v14  ;;  %v2790_v8 = vld [vmem:[%s4206_s13] ss:$0 sm:$0xff] }
 0x271   : > { %v1507_v9 = vpop.f32.mrf.mxu0 }
 0x272   : > { %v1508_v24 = vadd.f32 %v2788_v14, %v1507_v9 }
 0x273   : > { %v3101_v10 = vpop.f32.mrf.mxu0 }
 0x274   : > { %v1523_v21 = vadd.f32 %v3101_v10, %v2788_v14 }
 0x275   : > { %v1517_v11 = vpop.f32.mrf.mxu0 }
 0x276   : > { %v1518_v22 = vadd.f32 %v2788_v14, %v1517_v11 }
 0x277   : > { %v3104_v12 = vpop.f32.mrf.mxu0 }
 0x278   : > { %v1533_v19 = vadd.f32 %v3104_v12, %v2788_v14  ;;  %v1802_v12 = vld [vmem:[%s4209_s16] sm:$0xff] }
 0x279   : > { %v1527_v13 = vpop.f32.mrf.mxu0 }
 0x27a   : > { %v1528_v20 = vadd.f32 %v2788_v14, %v1527_v13  ;;  %v2792_v13 = vld [vmem:[%s4208_s15] ss:$0 sm:$0xff] }
 0x27b   : > { %v3107_v15 = vpop.f32.mrf.mxu0 }
 0x27c   : > { %v1543_v16 = vadd.f32 %v3107_v15, %v2788_v14 }
 0x27d   : > { %v1537_v17 = vpop.f32.mrf.mxu0 }
 0x27e   : > { %v1538_v18 = vadd.f32 %v2788_v14, %v1537_v17  ;;  %3109 = vmatpush3.msra.mxu1 %v1543_v16  ;;  %v3988_v17 = vld [vmem:[%s4213_s20 + $0x50] sm:$0xff] }
 0x27f   : > { %3110 = vmatprep.subr.mxu1 %v3374_v7 }
 0x280   : > { %3111 = vmatpush3.msra.mxu1 %v1538_v18  ;;  %v3995_v18 = vld [vmem:[%s4213_s20 + $0x48] sm:$0xff] }
 0x281   : > { %3112 = vmatprep.subr.mxu1 %v3374_v7 }
 0x282   : > { %3113 = vmatpush3.msra.mxu1 %v1533_v19  ;;  %v4002_v19 = vld [vmem:[%s4213_s20 + $0x40] sm:$0xff] }
 0x283   : > { %3114 = vmatprep.subr.mxu1 %v3374_v7 }
 0x284   : > { %3115 = vmatpush3.msra.mxu1 %v1528_v20  ;;  %v4009_v20 = vld [vmem:[%s4213_s20 + $0x38] sm:$0xff] }
 0x285   : > { %3116 = vmatprep.subr.mxu1 %v3374_v7 }
 0x286   : > { %3117 = vmatpush3.msra.mxu1 %v1523_v21  ;;  %v4016_v21 = vld [vmem:[%s4213_s20 + $0x30] sm:$0xff] }
 0x287   : > { %3118 = vmatprep.subr.mxu1 %v3374_v7 }
 0x288   : > { %3119 = vmatpush3.msra.mxu1 %v1518_v22  ;;  %v4023_v22 = vld [vmem:[%s4213_s20 + $0x28] sm:$0xff] }
 0x289   : > { %3120 = vmatprep.subr.mxu1 %v3374_v7 }
 0x28a   : > { %3121 = vmatpush3.msra.mxu1 %v1513_v23  ;;  %v4030_v23 = vld [vmem:[%s4213_s20 + $0x20] sm:$0xff] }
 0x28b   : > { %3122 = vmatprep.subr.mxu1 %v3374_v7 }
 0x28c   : > { %3123 = vmatpush3.msra.mxu1 %v1508_v24  ;;  %v4037_v24 = vld [vmem:[%s4213_s20 + $0x18] sm:$0xff] }
 0x28d   : > { %3125 = vmatmul.mubr.msk.f32.vlgmr.msra.gmra.mxu1 %vm1547_vm3, %v3739_v25  ;;  %3127 = vmatprep.subr.mxu1 %v3374_v7 }
 0x28e   : > { %3128 = vmatpush3.msra.mxu1 %v1628_v26  ;;  %3143 = vmatprep.mubr.msk.f32.mxu1 %vm3375_vm2, %v3374_v7  ;;  %v4053_v26 = vld [vmem:[%s4213_s20 + $0x8] sm:$0xff] }
 0x28f   : > { %3129 = vmatprep.subr.mxu1 %v3374_v7 }
 0x290   : > { %3130 = vmatpush3.msra.mxu1 %v1627_v27  ;;  %v4059_v27 = vld [vmem:[%s4213_s20] sm:$0xff] }
 0x291   : > { %3131 = vmatprep.subr.mxu1 %v3374_v7 }
 0x292   : > { %3132 = vmatpush3.msra.mxu1 %v1626_v28  ;;  %v2230_v28 = vld [vmem:[%s4215_s22 + $0x18] sm:$0x3f] }
 0x293   : > { %3133 = vmatprep.subr.mxu1 %v3374_v7 }
 0x294   : > { %3134 = vmatpush3.msra.mxu1 %v1625_v29  ;;  %v4072_v29 = vld [vmem:[%s4212_s19] ss:$0 sm:$0xff] }
 0x295   : > { %3135 = vmatprep.subr.mxu1 %v3374_v7 }
 0x296   : > { %3136 = vmatpush3.msra.mxu1 %v1624_v30 }
 0x297   : > { %3137 = vmatprep.subr.mxu1 %v3374_v7 }
 0x298   : > { %3138 = vmatpush3.msra.mxu1 %v1623_v31 }
 0x299   : > { %3139 = vmatprep.subr.mxu1 %v3374_v7 }
 0x29a   : > { %3140 = vmatpush3.msra.mxu1 %v1622_v32 }
 0x29b   : > { %3141 = vmatprep.subr.mxu1 %v3374_v7 }
 0x29c   : > { %3142 = vmatpush3.msra.mxu1 %v1621_v33 }
 0x29d   : > { %3181 = vmatprep.subr.mxu1 %v3374_v7 }
 0x34d   : > { %v1617_v60 = vpop.f32.mrf.mxu1 }
 0x34e   : > { %3144 = vmatmul.mubr.msk.f32.vlgmr.msra.gmra.mxu1 %vm1547_vm3, %v1617_v60 }
 0x34f   : > { %v3126_v61 = vpop.f32.mrf.mxu1  ;;  %3189 = vmatprep.mubr.msk.f32.mxu1 %vm3375_vm2, %v3374_v7  ;;  %3182 = vmatpush3.msk.msra.mxu1 %vm1817_vm4, %v1805_v4 }
 0x350   : > { %3183 = vmatprep.subr.mxu1 %v3374_v7 }
 0x351   : > { %3184 = vmatpush3.msra.mxu1 %v1804_v5 }
 0x352   : > { %3185 = vmatprep.subr.mxu1 %v3374_v7 }
 0x353   : > { %3186 = vmatpush3.msra.mxu1 %v1803_v6 }
 0x354   : > { %3187 = vmatprep.subr.mxu1 %v3374_v7 }
 0x355   : > { %3188 = vmatpush3.msra.mxu1 %v1802_v12 }
 0x356   : > { %3192 = vmatprep.subr.mxu1 %v3374_v7 }
 0x40e   : > { %v1705_v9 = vpop.f32.mrf.mxu1 }
 0x40f   : > { %v1706_v10 = vadd.f32 %v2790_v8, %v1705_v9 }
 0x410   : > { %v3145_v11 = vpop.f32.mrf.mxu1 }
 0x411   : > { %3179 = vmatmul.mubr.f32.vlgmr.msra.gmra.mxu0 %v1706_v10  ;;  %v2515_v11 = vld [vmem:[%s4215_s22 + $0x18] sm:$0x3f] }
 0x412   : > { %3238 = vmatprep.mubr.msk.f32.mxu0 %vm3375_vm2, %v3374_v7 }
 0x4d1   : > { %v1798_v14 = vpop.f32.mrf.mxu0 }
 0x4d2   : > { %v1799_v15 = vadd.f32 %v2792_v13, %v1798_v14 }
 0x4d3   : > { %v3180_v16 = vpop.f32.mrf.mxu0 }
 0x4d4   : > { %3190 = vmatmul.mubr.msk.f32.vlgmr.msra.gmra.mxu1 %vm1813_vm5, %v1799_v15 }
 0x4d5   : > { %3193 = vmatpush3.msra.mxu1 %v3670_v0  ;;  %3208 = vmatprep.mubr.msk.f32.mxu1 %vm3375_vm2, %v3374_v7  ;;  %v3974_v0 = vld [vmem:[%s4213_s20 + $0x60] sm:$0xff] }
 0x4d6   : > { %3194 = vmatprep.subr.mxu1 %v3374_v7 }
 0x4d7   : > { %3195 = vmatpush3.msra.mxu1 %v3666_v62  ;;  %v3958_v62 = vld [vmem:[%s4213_s20 + $0x70] sm:$0xff] }
 0x4d8   : > { %3196 = vmatprep.subr.mxu1 %v3374_v7 }
 0x4d9   : > { %3197 = vmatpush3.msra.mxu1 %v3651_v55 }
 0x4da   : > { %3198 = vmatprep.subr.mxu1 %v3374_v7 }
 0x4db   : > { %3199 = vmatpush3.msra.mxu1 %v3647_v53 }
 0x4dc   : > { %3200 = vmatprep.subr.mxu1 %v3374_v7 }
 0x4dd   : > { %3201 = vmatpush3.msra.mxu1 %v3632_v46 }
 0x4de   : > { %3202 = vmatprep.subr.mxu1 %v3374_v7 }
 0x4df   : > { %3203 = vmatpush3.msra.mxu1 %v3628_v44  ;;  %v2793_v44 = vld [vmem:[%s4210_s17] ss:$0 sm:$0xff] }
 0x4e0   : > { %3204 = vmatprep.subr.mxu1 %v3374_v7 }
 0x4e1   : > { %3205 = vmatpush3.msra.mxu1 %v3613_v37  ;;  %v3922_v37 = vld [vmem:[%s4211_s18 + $0x10] sm:$0xff] }
 0x4e2   : > { %3206 = vmatprep.subr.mxu1 %v3374_v7 }
 0x4e3   : > { %3207 = vmatpush3.msra.mxu1 %v3609_v35  ;;  %v3917_v35 = vld [vmem:[%s4211_s18 + $0x18] sm:$0xff] }
 0x4e4   : > { %3209 = vmatmul.mubr.msk.f32.vlgmr.msra.gmra.mxu1 %vm1547_vm3, %v3739_v25  ;;  %3211 = vmatprep.subr.mxu1 %v3374_v7 }
 0x4e5   : > { %3212 = vmatpush3.msra.mxu1 %v3672_v1  ;;  %3227 = vmatprep.mubr.msk.f32.mxu1 %vm3375_vm2, %v3374_v7  ;;  %v3981_v1 = vld [vmem:[%s4213_s20 + $0x58] sm:$0xff] }
 0x4e6   : > { %3213 = vmatprep.subr.mxu1 %v3374_v7  ;;  %3231 = vmatpush3.msra.mxu0 %v3917_v35 }
 0x4e7   : > { %3214 = vmatpush3.msra.mxu1 %v3668_v63  ;;  %3232 = vmatprep.subr.mxu0 %v3374_v7  ;;  %v3967_v63 = vld [vmem:[%s4213_s20 + $0x68] sm:$0xff] }
 0x4e8   : > { %3215 = vmatprep.subr.mxu1 %v3374_v7  ;;  %3233 = vmatpush3.msra.mxu0 %v3922_v37 }
 0x4e9   : > { %3216 = vmatpush3.msra.mxu1 %v3653_v56  ;;  %3234 = vmatprep.subr.mxu0 %v3374_v7  ;;  %v3953_v56 = vld [vmem:[%s4213_s20 + $0x78] sm:$0xff] }
 0x4ea   : > { %3217 = vmatprep.subr.mxu1 %v3374_v7 }
 0x4eb   : > { %3218 = vmatpush3.msra.mxu1 %v3649_v54 }
 0x4ec   : > { %3219 = vmatprep.subr.mxu1 %v3374_v7 }
 0x4ed   : > { %3220 = vmatpush3.msra.mxu1 %v3634_v47 }
 0x4ee   : > { %3221 = vmatprep.subr.mxu1 %v3374_v7 }
 0x4ef   : > { %3222 = vmatpush3.msra.mxu1 %v3630_v45 }
 0x4f0   : > { %3223 = vmatprep.subr.mxu1 %v3374_v7 }
 0x4f1   : > { %3224 = vmatpush3.msra.mxu1 %v3615_v38  ;;  %v3938_v38 = vld [vmem:[%s4211_s18] sm:$0xff] }
 0x4f2   : > { %3225 = vmatprep.subr.mxu1 %v3374_v7 }
 0x4f3   : > { %3226 = vmatpush3.msra.mxu1 %v3611_v36  ;;  %v3929_v36 = vld [vmem:[%s4211_s18 + $0x8] sm:$0xff] }
 0x4f4   : > { %3228 = vmatmul.mubr.msk.f32.vlgmr.msra.gmra.mxu1 %vm1547_vm3, %v3739_v25  ;;  %3276 = vmatprep.subr.mxu1 %v3374_v7  ;;  %v4046_v25 = vld [vmem:[%s4213_s20 + $0x10] sm:$0xff] }
 0x4f5   : > { %3284 = vmatprep.mubr.msk.f32.mxu1 %vm3375_vm2, %v3374_v7  ;;  %3235 = vmatpush3.msra.mxu0 %v3929_v36 }
 0x4f6   : > { %3236 = vmatprep.subr.mxu0 %v3374_v7  ;;  %3277 = vmatpush3.msk.msra.mxu1 %vm1817_vm4, %v2230_v28 }
 0x4f7   : > { %3237 = vmatpush3.msra.mxu0 %v3938_v38  ;;  %3278 = vmatprep.subr.mxu1 %v3374_v7 }
 0x4f8   : > { %3241 = vmatprep.subr.mxu0 %v3374_v7  ;;  %3279 = vmatpush3.msra.mxu1 %v4080_v39 }
 0x4f9   : > { %3280 = vmatprep.subr.mxu1 %v3374_v7 }
 0x4fa   : > { %3281 = vmatpush3.msra.mxu1 %v4087_v40 }
 0x4fb   : > { %3282 = vmatprep.subr.mxu1 %v3374_v7 }
 0x4fc   : > { %3283 = vmatpush3.msra.mxu1 %v4094_v41 }
 0x4fd   : > { %3287 = vmatprep.subr.mxu1 %v3374_v7 }
 0x594   : > { %v1887_v45 = vpop.f32.mrf.mxu1 }
 0x595   : > { %v3945_v46 = vadd.f32 %v2793_v44, %v1887_v45 }
 0x596   : > { %v3191_v47 = vpop.f32.mrf.mxu1 }
 0x597   : > { %v1892_v53 = vsel %vm1891_vm6, %v3945_v46, -inf }
 0x598   : > { %1893 = vmax.xlane.f32.xlu0 %v1892_v53 }
 0x5a4   : > { %v1970_v54 = vpop.f32.mrf.mxu1 }
 0x5a5   : > { %3239 = vmatmul.mubr.msk.f32.vlgmr.msra.gmra.mxu0 %vm1136_vm1, %v1970_v54 }
 0x5a6   : > { %v3210_v55 = vpop.f32.mrf.mxu1  ;;  %3273 = vmatprep.mubr.msk.f32.mxu0 %vm3375_vm2, %v3374_v7  ;;  %3242 = vmatpush3.msra.mxu0 %v3953_v56 }
 0x5a7   : > { %3243 = vmatprep.subr.mxu0 %v3374_v7 }
 0x5a8   : > { %3244 = vmatpush3.msra.mxu0 %v3958_v62 }
 0x5a9   : > { %3245 = vmatprep.subr.mxu0 %v3374_v7 }
 0x5aa   : > { %3246 = vmatpush3.msra.mxu0 %v3967_v63 }
 0x5ab   : > { %3247 = vmatprep.subr.mxu0 %v3374_v7 }
 0x5ac   : > { %3248 = vmatpush3.msra.mxu0 %v3974_v0 }
 0x5ad   : > { %3249 = vmatprep.subr.mxu0 %v3374_v7 }
 0x5ae   : > { %3250 = vmatpush3.msra.mxu0 %v3981_v1 }
 0x5af   : > { %3251 = vmatprep.subr.mxu0 %v3374_v7 }
 0x5b0   : > { %3252 = vmatpush3.msra.mxu0 %v3988_v17 }
 0x5b1   : > { %3253 = vmatprep.subr.mxu0 %v3374_v7 }
 0x5b2   : > { %3254 = vmatpush3.msra.mxu0 %v3995_v18 }
 0x5b3   : > { %3255 = vmatprep.subr.mxu0 %v3374_v7 }
 0x5b4   : > { %3256 = vmatpush3.msra.mxu0 %v4002_v19  ;;  %v2040_v42 = vpop.f32.mrf.mxu1 }
 0x5b5   : > { %3257 = vmatprep.subr.mxu0 %v3374_v7 }
 0x5b6   : > { %3258 = vmatpush3.msra.mxu0 %v4009_v20  ;;  %v3229_v43 = vpop.f32.mrf.mxu1 }
 0x5b7   : > { %3259 = vmatprep.subr.mxu0 %v3374_v7 }
 0x5b8   : > { %3260 = vmatpush3.msra.mxu0 %v4016_v21 }
 0x5b9   : > { %3261 = vmatprep.subr.mxu0 %v3374_v7 }
 0x5ba   : > { %3262 = vmatpush3.msra.mxu0 %v4023_v22 }
 0x5bb   : > { %3263 = vmatprep.subr.mxu0 %v3374_v7 }
 0x5bc   : > { %3264 = vmatpush3.msra.mxu0 %v4030_v23 }
 0x5bd   : > { %3265 = vmatprep.subr.mxu0 %v3374_v7 }
 0x5be   : > { %3266 = vmatpush3.msra.mxu0 %v4037_v24 }
 0x5bf   : > { %3267 = vmatprep.subr.mxu0 %v3374_v7 }
 0x5c0   : > { %3268 = vmatpush3.msra.mxu0 %v4046_v25 }
 0x5c1   : > { %3269 = vmatprep.subr.mxu0 %v3374_v7 }
 0x5c2   : > { %3270 = vmatpush3.msra.mxu0 %v4053_v26 }
 0x5c3   : > { %3271 = vmatprep.subr.mxu0 %v3374_v7 }
 0x5c4   : > { %3272 = vmatpush3.msra.mxu0 %v4059_v27 }
 0x5c5   : > { %3333 = vmatprep.subr.mxu0 %v3374_v7 }
 0x621   : > { %v1894_v12 = vpop.xlane.xlu0 %1893 }
 0x622   : > { %v1895_v54 = vsub.f32 %v3945_v46, %v1894_v12 }
 0x624   : > { %v1896_v55 = vmul.f32 1.442695, %v1895_v54 }
 0x665   : > { %v2124_v30 = vpop.f32.mrf.mxu0 }
 0x666   : > { %v2125_v31 = vadd.f32 %v4072_v29, %v2124_v30 }
 0x667   : > { %v3240_v32 = vpop.f32.mrf.mxu0 }
 0x668   : > { %vm2128_vm7 = vcmp.ge.f32.partialorder %v2125_v31, 0.0  ;;  %v2129_v33 = vmul.f32 0.01, %v2125_v31 }
 0x66a   : > { %v2130_v34 = vsel %vm2128_vm7, %v2125_v31, %v2129_v33 }
 0x66b   : > { %3274 = vmatmul.mubr.f32.vlgmr.msra.gmra.mxu0 %v2130_v34 }
 0x66c   : > { %3341 = vmatprep.mubr.msk.f32.mxu0 %vm3375_vm2, %v3374_v7  ;;  %3334 = vmatpush3.msk.msra.mxu0 %vm1817_vm4, %v2515_v11 }
 0x66d   : > { %3335 = vmatprep.subr.mxu0 %v3374_v7 }
 0x66e   : > { %3336 = vmatpush3.msra.mxu0 %v4080_v39 }
 0x66f   : > { %3337 = vmatprep.subr.mxu0 %v3374_v7 }
 0x670   : > { %3338 = vmatpush3.msra.mxu0 %v4087_v40 }
 0x671   : > { %3339 = vmatprep.subr.mxu0 %v3374_v7 }
 0x672   : > { %3340 = vmatpush3.msra.mxu0 %v4094_v41 }
 0x72b   : > { %v2220_v49 = vpop.f32.mrf.mxu0 }
 0x72c   : > { %v2221_v50 = vadd.f32 %v4101_v48, %v2220_v49 }
 0x72d   : > { %v3275_v51 = vpop.f32.mrf.mxu0 }
 0x72e   : > { %vm2224_vm8 = vcmp.ge.f32.partialorder %v2221_v50, 0.0  ;;  %v2225_v52 = vmul.f32 0.01, %v2221_v50 }
 0x730   : > { %v2226_v57 = vsel %vm2224_vm8, %v2221_v50, %v2225_v52 }
 0x731   : > { %3285 = vmatmul.mubr.msk.f32.vlgmr.msra.gmra.mxu1 %vm1813_vm5, %v2226_v57 }
 0x732   : > { %3288 = vmatpush3.msra.mxu1 %v3917_v35  ;;  %3295 = vmatprep.mubr.msk.f32.mxu1 %vm3375_vm2, %v3374_v7 }
 0x733   : > { %3289 = vmatprep.subr.mxu1 %v3374_v7 }
 0x734   : > { %3290 = vmatpush3.msra.mxu1 %v3922_v37 }
 0x735   : > { %3291 = vmatprep.subr.mxu1 %v3374_v7 }
 0x736   : > { %3292 = vmatpush3.msra.mxu1 %v3929_v36 }
 0x737   : > { %3293 = vmatprep.subr.mxu1 %v3374_v7 }
 0x738   : > { %3294 = vmatpush3.msra.mxu1 %v3938_v38 }
 0x739   : > { %3296 = vmatmul.mubr.msk.f32.vlgmr.msra.gmra.mxu1 %vm1136_vm1, %v2040_v42  ;;  %3298 = vmatprep.subr.mxu1 %v3374_v7 }
 0x73a   : > { %3299 = vmatpush3.msra.mxu1 %v3953_v56  ;;  %3330 = vmatprep.mubr.msk.f32.mxu1 %vm3375_vm2, %v3374_v7 }
 0x73b   : > { %3300 = vmatprep.subr.mxu1 %v3374_v7 }
 0x73c   : > { %3301 = vmatpush3.msra.mxu1 %v3958_v62 }
 0x73d   : > { %3302 = vmatprep.subr.mxu1 %v3374_v7 }
 0x73e   : > { %3303 = vmatpush3.msra.mxu1 %v3967_v63 }
 0x73f   : > { %3304 = vmatprep.subr.mxu1 %v3374_v7 }
 0x740   : > { %3305 = vmatpush3.msra.mxu1 %v3974_v0 }
 0x741   : > { %3306 = vmatprep.subr.mxu1 %v3374_v7 }
 0x742   : > { %3307 = vmatpush3.msra.mxu1 %v3981_v1 }
 0x743   : > { %3308 = vmatprep.subr.mxu1 %v3374_v7 }
 0x744   : > { %3309 = vmatpush3.msra.mxu1 %v3988_v17 }
 0x745   : > { %3310 = vmatprep.subr.mxu1 %v3374_v7 }
 0x746   : > { %3311 = vmatpush3.msra.mxu1 %v3995_v18 }
 0x747   : > { %3312 = vmatprep.subr.mxu1 %v3374_v7 }
 0x748   : > { %3313 = vmatpush3.msra.mxu1 %v4002_v19 }
 0x749   : > { %3314 = vmatprep.subr.mxu1 %v3374_v7 }
 0x74a   : > { %3315 = vmatpush3.msra.mxu1 %v4009_v20 }
 0x74b   : > { %3316 = vmatprep.subr.mxu1 %v3374_v7 }
 0x74c   : > { %3317 = vmatpush3.msra.mxu1 %v4016_v21 }
 0x74d   : > { %3318 = vmatprep.subr.mxu1 %v3374_v7 }
 0x74e   : > { %3319 = vmatpush3.msra.mxu1 %v4023_v22 }
 0x74f   : > { %3320 = vmatprep.subr.mxu1 %v3374_v7 }
 0x750   : > { %3321 = vmatpush3.msra.mxu1 %v4030_v23 }
 0x751   : > { %3322 = vmatprep.subr.mxu1 %v3374_v7 }
 0x752   : > { %3323 = vmatpush3.msra.mxu1 %v4037_v24 }
 0x753   : > { %3324 = vmatprep.subr.mxu1 %v3374_v7 }
 0x754   : > { %3325 = vmatpush3.msra.mxu1 %v4046_v25 }
 0x755   : > { %3326 = vmatprep.subr.mxu1 %v3374_v7 }
 0x756   : > { %3327 = vmatpush3.msra.mxu1 %v4053_v26 }
 0x757   : > { %3328 = vmatprep.subr.mxu1 %v3374_v7 }
 0x758   : > { %3329 = vmatpush3.msra.mxu1 %v4059_v27 }
 0x7f1   : > { %v2310_v59 = vpop.f32.mrf.mxu1 }
 0x7f2   : > { %v2311_v60 = vadd.f32 %v2801_v58, %v2310_v59 }
 0x7f3   : > { %v3286_v61 = vpop.f32.mrf.mxu1 }
 0x7f4   : > { %v2315_v2 = vmul.f32 0.01, %v2311_v60  ;;  %vm2314_vm9 = vcmp.ge.f32.partialorder %v2311_v60, 0.0 }
 0x7f6   : > { %v2316_v3 = vsel %vm2314_vm9, %v2311_v60, %v2315_v2 }
 0x7f7   : > { %v2317_v4 = vsel %vm1891_vm6, %v2316_v3, -inf }
 0x7f8   : > { %2318 = vmax.xlane.f32.xlu0 %v2317_v4 }
 0x7f9   : > { %v2409_v5 = vpop.f32.mrf.mxu1 }
 0x7fa   : > { %v2410_v6 = vadd.f32 %v4072_v29, %v2409_v5 }
 0x7fb   : > { %v3297_v8 = vpop.f32.mrf.mxu1 }
 0x7fc   : > { %vm2413_vm10 = vcmp.ge.f32.partialorder %v2410_v6, 0.0  ;;  %v2414_v9 = vmul.f32 0.01, %v2410_v6 }
 0x7fe   : > { %v2415_v10 = vsel %vm2413_vm10, %v2410_v6, %v2414_v9 }
 0x7ff   : > { %3331 = vmatmul.mubr.f32.vlgmr.msra.gmra.mxu1 %v2415_v10 }
 0x881   : > { %v2319_v13 = vpop.xlane.xlu0 %2318 }
 0x882   : > { %v2320_v14 = vsub.f32 %v2316_v3, %v2319_v13 }
 0x884   : > { %v2321_v15 = vmul.f32 1.442695, %v2320_v14 }
 0x886   : > { %3354 = vpow2.f32 %v2321_v15 }
 0x893   : > { %v3355_v16 = vpop.eup %3354 }
 0x894   : > { %v2323_v35 = vsel %vm1891_vm6, %v3355_v16, 0.0 }
 0x895   : > { %2324 = vadd.xlane.f32.xlu0 %v2323_v35 }
 0x8bf   : > { %v2505_v37 = vpop.f32.mrf.mxu1 }
 0x8c0   : > { %v2506_v36 = vadd.f32 %v4101_v48, %v2505_v37 }
 0x8c1   : > { %v3332_v38 = vpop.f32.mrf.mxu1 }
 0x8c2   : > { %vm2509_vm11 = vcmp.ge.f32.partialorder %v2506_v36, 0.0  ;;  %v2510_v44 = vmul.f32 0.01, %v2506_v36 }
 0x8c4   : > { %v2511_v7 = vsel %vm2509_vm11, %v2506_v36, %v2510_v44 }
 0x8c5   : > { %3342 = vmatmul.mubr.msk.f32.vlgmr.msra.gmra.mxu0 %vm1813_vm5, %v2511_v7 }
 0x91e   : > { %v2325_v45 = vpop.xlane.xlu0 %2324 }
 0x91f   : > { %3356 = vrcp.f32 %v2325_v45 }
 0x920   : > { %3358 = vpow2.f32 %v1896_v55 }
 0x92c   : > { %v3357_v47 = vpop.eup %3356 }
 0x92d   : > { %v2327_v53 = vmul.f32 %v3357_v47, %v3355_v16  ;;  %v3359_v18 = vpop.eup %3358 }
 0x92e   : > { %v1898_v19 = vsel %vm1891_vm6, %v3359_v18, 0.0 }
 0x92f   : > { %2328 = vst.msk [vmem:[%s830_s8] sm:$0xff] %vm1891_vm6, %v2327_v53 }
 0x985   : > { %v2595_v56 = vpop.f32.mrf.mxu0 }
 0x986   : > { %v2596_v62 = vadd.f32 %v2801_v58, %v2595_v56 }
 0x987   : > { %v3343_v63 = vpop.f32.mrf.mxu0 }
 0x988   : > { %v2600_v0 = vmul.f32 0.01, %v2596_v62  ;;  %vm2599_vm12 = vcmp.ge.f32.partialorder %v2596_v62, 0.0 }
 0x98a   : > { %v2601_v1 = vsel %vm2599_vm12, %v2596_v62, %v2600_v0 }
 0x98b   : > { %v2602_v17 = vsel %vm1891_vm6, %v2601_v1, -inf }
 0x98c   : > { %2603 = vmax.xlane.f32.xlu1 %v2602_v17 }
 0x990   : > { %1899 = vadd.xlane.f32.xlu1 %v1898_v19 }
 0xa15   : > { %v2604_v20 = vpop.xlane.xlu1 %2603 }
 0xa16   : > { %v2605_v21 = vsub.f32 %v2601_v1, %v2604_v20 }
 0xa18   : > { %v2606_v46 = vmul.f32 1.442695, %v2605_v21 }
 0xa19   : > { %v1900_v22 = vpop.xlane.xlu1 %1899 }
 0xa1a   : > { %3360 = vpow2.f32 %v2606_v46 }
 0xa1b   : > { %3362 = vrcp.f32 %v1900_v22 }
 0xa27   : > { %v3361_v23 = vpop.eup %3360 }
 0xa28   : > { %v3363_v24 = vpop.eup %3362  ;;  %v2608_v25 = vsel %vm1891_vm6, %v3361_v23, 0.0 }
 0xa29   : > { %v1902_v26 = vmul.f32 %v3363_v24, %v3359_v18  ;;  %2609 = vadd.xlane.f32.xlu1 %v2608_v25 }
 0xa2b   : > { %1903 = vst.msk [vmem:[%s826_s4] sm:$0xff] %vm1891_vm6, %v1902_v26 }
 0xab2   : > { %v2610_v27 = vpop.xlane.xlu1 %2609 }
 0xab3   : > { %3364 = vrcp.f32 %v2610_v27 }
 0xac0   : > { %v3365_v28 = vpop.eup %3364 }
 0xac1   : > { %v2612_v29 = vmul.f32 %v3365_v28, %v3361_v23 }
 0xac3   : > { %2613 = vst.msk [vmem:[%s834_s30] sm:$0xff] %vm1891_vm6, %v2612_v29 }
 0xac4 PF: > { %s37_s27 = sadd.s32 1, %s3372_s27  }
 0xac5   : > { %p34_p5 = scmp.ge.s32.totalorder %s37_s27, 4  }
 0xac7   :  { %36 = sbr.rel (!%p34_p5) target bundleno = 12 (0xc), region = 173 }

</bundles_post_ra>
